<compile_context>
chip_gen: v5e
topology: v5e:2x2
jax: 0.10.0
libtpu: 0.0.40
codegen_flags: <defaults>
</compile_context>

<pallas_src>
import jax
import jax.numpy as jnp
from jax.experimental import pallas as pl
from jax.experimental.pallas import tpu as pltpu

BN_EPS = 1e-5          # PyTorch BatchNorm1d default eps
NEG_MASK = -1e30       # masks padded class columns out of the softmax
LANE = 128
SUBLANE = 8


def _round_up(n, m):
    return ((n + m - 1) // m) * m


def _pad_last2(a, rows, cols):
    pad = [(0, 0)] * (a.ndim - 2) + [(0, rows - a.shape[-2]), (0, cols - a.shape[-1])]
    return jnp.pad(a, pad)


def _nbytes(shape, dtype):
    n = 1
    for s in shape:
        n *= int(s)
    return n * jnp.dtype(dtype).itemsize


# ---------------------------------------------------------------------------
# Kernel: one grid step == one graph group (TM padded nodes, TG graph slots)
# ---------------------------------------------------------------------------
def _gin_kernel(x_ref, adj_ref, pool_ref,
                w1_ref, b1_ref,              # conv1..5 first Linear (BN folded), (5,P,P)/(5,1,P)
                w2_ref, b2_ref,              # conv1..5 second Linear,            (5,P,P)/(5,1,P)
                lin1_w_ref, lin1_b_ref, lin2_w_ref, lin2_b_ref,
                out_ref):
    adj = adj_ref[...]          # (TM, TM) bf16, A_hat = A + (1+eps)*I, block-diag per group
    h = x_ref[...]              # (TM, P)  bf16

    for layer in range(5):      # unrolled at trace time (5 small layers)
        # GINConv aggregation (self term folded into adj) -> Linear(+BN folded) -> ReLU
        # -> Linear -> ReLU.  bf16 MXU inputs, f32 accumulation, f32 elementwise.
        z = jnp.dot(adj, h, preferred_element_type=jnp.float32)                  # (TM, P) f32
        z = jnp.dot(z.astype(jnp.bfloat16), w1_ref[layer],
                    preferred_element_type=jnp.float32) + b1_ref[layer]
        z = jnp.maximum(z, 0.0)
        z = jnp.dot(z.astype(jnp.bfloat16), w2_ref[layer],
                    preferred_element_type=jnp.float32) + b2_ref[layer]
        h = jnp.maximum(z, 0.0).astype(jnp.bfloat16)

    # global_add_pool: pooling rows of this group select its graphs' node rows
    pooled = jnp.dot(pool_ref[...], h, preferred_element_type=jnp.float32)        # (TG, P) f32

    # head: lin1 -> relu -> dropout(eval: identity) -> lin2 -> log_softmax
    t = jnp.dot(pooled.astype(jnp.bfloat16), lin1_w_ref[...],
                preferred_element_type=jnp.float32) + lin1_b_ref[...]
    t = jnp.maximum(t, 0.0)
    # TODO(synk): F.dropout(p=0.5) is identity in eval mode (training=False); not applied.
    logits = jnp.dot(t.astype(jnp.bfloat16), lin2_w_ref[...],
                     preferred_element_type=jnp.float32) + lin2_b_ref[...]

    # padded class columns carry bias = -1e30 -> contribute exp(...)=0 to the sum
    m = jnp.max(logits, axis=-1, keepdims=True)
    lse = m + jnp.log(jnp.sum(jnp.exp(logits - m), axis=-1, keepdims=True))
    out_ref[...] = logits - lse


# ---------------------------------------------------------------------------
# Graph packing + parameter / operand preparation (plain JAX glue)
# ---------------------------------------------------------------------------
def _pack_graphs(node_counts, nodes_per_group, graphs_per_group):
    """Greedy sequential packing of graphs into groups; returns list of graph-id lists."""
    groups, cur, cur_nodes = [], [], 0
    for gi, n in enumerate(node_counts):
        if n > nodes_per_group:
            raise ValueError(f"graph {gi} has {n} nodes > nodes_per_group={nodes_per_group}")
        if cur and (cur_nodes + n > nodes_per_group or len(cur) >= graphs_per_group):
            groups.append(cur)
            cur, cur_nodes = [], 0
        cur.append(gi)
        cur_nodes += n
    if cur:
        groups.append(cur)
    return groups


def prepare_operands(xs, adjs, params, eps=0.0, nodes_per_group=128, graphs_per_group=8):
    """Fold BN + (1+eps) self term, pack graphs into lane-dense per-group blocks."""
    f_in = xs[0].shape[1]
    dim = params["w2_all"].shape[-1]
    c = params["lin2_w"].shape[-1]

    tm = _round_up(nodes_per_group, LANE)       # node budget per group (M of the matmuls)
    tg = _round_up(graphs_per_group, SUBLANE)   # graph slots per group (output sublanes)
    p = _round_up(max(f_in, dim), LANE)         # unified feature width (kept at 128 lanes)
    c_p = _round_up(c, LANE)                    # padded class width

    groups = _pack_graphs([x.shape[0] for x in xs], tm, graphs_per_group)
    n_groups = len(groups)

    # ---- per-group packing: block-diagonal A_hat, node features, pooling rows ----
    x_blocks, adj_blocks, pool_blocks = [], [], []
    out_rows = [0] * len(xs)
    for g, members in enumerate(groups):
        n_g = sum(xs[i].shape[0] for i in members)
        xg = jnp.concatenate([xs[i] for i in members], axis=0)            # (n_g, f_in)
        ag = jnp.zeros((n_g, n_g), jnp.float32)
        pg = jnp.zeros((tg, n_g), jnp.float32)
        off = 0
        for s, i in enumerate(members):
            ni = xs[i].shape[0]
            ag = ag.at[off:off + ni, off:off + ni].set(adjs[i])
            pg = pg.at[s, off:off + ni].set(1.0)
            out_rows[i] = g * tg + s
            off += ni
        # fold (1+eps)*x self term into the adjacency diagonal (exact in bf16 for eps=0)
        # NOTE: if eps != 0 is not bf16-representable, add the self term in-kernel in f32.
        ag = ag + (1.0 + eps) * jnp.eye(n_g, dtype=jnp.float32)
        # TODO(synk): for very large node budgets, store A_hat as int8 in HBM and widen per
        # tile (entries are small integer counts) to halve adjacency DMA traffic.
        adj_blocks.append(_pad_last2(ag, tm, tm).astype(jnp.bfloat16))
        x_blocks.append(_pad_last2(xg, tm, p).astype(jnp.bfloat16))
        pool_blocks.append(_pad_last2(pg, tg, tm).astype(jnp.bfloat16))

    x_all = jnp.concatenate(x_blocks, axis=0)        # (G*TM, P)  bf16
    adj_all = jnp.concatenate(adj_blocks, axis=0)    # (G*TM, TM) bf16
    pool_all = jnp.concatenate(pool_blocks, axis=0)  # (G*TG, TM) bf16

    # ---- fold BatchNorm (eval) into the first Linear of each conv, in f32 ----
    scale = params["bn_gamma"] / jnp.sqrt(params["bn_var"] + BN_EPS)      # (5,1,dim)
    w1_list, b1_list = [], []
    for layer in range(5):
        if layer == 0:
            w1, b1 = params["w1_first"], params["b1_first"]
        else:
            w1, b1 = params["w1_rest"][layer - 1], params["b1_rest"][layer - 1]
        w1f = w1 * scale[layer]
        b1f = (b1 - params["bn_mean"][layer]) * scale[layer] + params["bn_beta"][layer]
        w1_list.append(_pad_last2(w1f, p, p))
        b1_list.append(_pad_last2(b1f, 1, p))
    w1_all = jnp.stack(w1_list).astype(jnp.bfloat16)      # (5, P, P) bf16
    b1_all = jnp.stack(b1_list)                            # (5, 1, P) f32

    w2_all = _pad_last2(params["w2_all"], p, p).astype(jnp.bfloat16)       # (5, P, P)
    b2_all = _pad_last2(params["b2_all"], 1, p)                            # (5, 1, P)

    lin1_w = _pad_last2(params["lin1_w"], p, p).astype(jnp.bfloat16)
    lin1_b = _pad_last2(params["lin1_b"], 1, p)
    lin2_w = _pad_last2(params["lin2_w"], p, c_p).astype(jnp.bfloat16)
    # padded classes get a huge negative bias -> excluded from the softmax
    lin2_b = jnp.full((1, c_p), NEG_MASK, jnp.float32).at[:, :c].set(params["lin2_b"])

    operands = (x_all, adj_all, pool_all, w1_all, b1_all, w2_all, b2_all,
                lin1_w, lin1_b, lin2_w, lin2_b)
    meta = dict(out_rows=out_rows, c=c, tm=tm, tg=tg, p=p, c_p=c_p, n_groups=n_groups)
    return operands, meta


def gin_forward_pallas(xs, adjs, params, eps=0.0, nodes_per_group=128, graphs_per_group=8):
    operands, meta = prepare_operands(xs, adjs, params, eps, nodes_per_group, graphs_per_group)
    tm, tg, p, c_p = meta["tm"], meta["tg"], meta["p"], meta["c_p"]
    n_groups, c = meta["n_groups"], meta["c"]

    # Per-group blocks vary with the grid index; weights use constant index_maps -> resident.
    in_specs = [
        pl.BlockSpec((tm, p),   lambda i: (i, 0)),          # node features
        pl.BlockSpec((tm, tm),  lambda i: (i, 0)),          # A_hat (block-diag per group)
        pl.BlockSpec((tg, tm),  lambda i: (i, 0)),          # pooling rows
        pl.BlockSpec((5, p, p), lambda i: (0, 0, 0)),       # conv w1 stack (resident)
        pl.BlockSpec((5, 1, p), lambda i: (0, 0, 0)),       # conv b1 stack
        pl.BlockSpec((5, p, p), lambda i: (0, 0, 0)),       # conv w2 stack
        pl.BlockSpec((5, 1, p), lambda i: (0, 0, 0)),       # conv b2 stack
        pl.BlockSpec((p, p),    lambda i: (0, 0)),          # lin1_w
        pl.BlockSpec((1, p),    lambda i: (0, 0)),          # lin1_b
        pl.BlockSpec((p, c_p),  lambda i: (0, 0)),          # lin2_w
        pl.BlockSpec((1, c_p),  lambda i: (0, 0)),          # lin2_b (padded classes = -1e30)
    ]
    out_spec = pl.BlockSpec((tg, c_p), lambda i: (i, 0))

    # VMEM budget: double-buffered per-step blocks + f32 tile intermediates + small scratch
    # margin, clamped to the physical VMEM capacity (no 3x whole-operand inflation).
    block_shapes = [(tm, p), (tm, tm), (tg, tm), (5, p, p), (5, 1, p), (5, p, p), (5, 1, p),
                    (p, p), (1, p), (p, c_p), (1, c_p)]
    block_bytes = sum(2 * _nbytes(s, op.dtype) for s, op in zip(block_shapes, operands))
    block_bytes += 2 * _nbytes((tg, c_p), jnp.float32)            # output block
    interm_bytes = 8 * _nbytes((tm, p), jnp.float32)              # f32 tile temporaries
    try:
        vmem_cap = int(pltpu.get_tpu_info().vmem_capacity_bytes)
    except Exception:
        vmem_cap = 64 << 20
    vmem_limit = int(min(vmem_cap, max(block_bytes + interm_bytes + (2 << 20), 8 << 20)))

    out = pl.pallas_call(
        _gin_kernel,
        out_shape=jax.ShapeDtypeStruct((n_groups * tg, c_p), jnp.float32),
        grid=(n_groups,),
        in_specs=in_specs,
        out_specs=out_spec,
        compiler_params=pltpu.CompilerParams(
            dimension_semantics=("parallel",),      # independent groups -> both v7x TCs
            vmem_limit_bytes=vmem_limit),
    )(*operands)

    rows = jnp.asarray(meta["out_rows"], jnp.int32)
    return out[rows][:, :c]


# ---------------------------------------------------------------------------
# References
# ---------------------------------------------------------------------------
def gin_forward_prepared_reference(xs, adjs, params, eps=0.0,
                                   nodes_per_group=128, graphs_per_group=8):
    """Pure-JAX mirror of the exact kernel math on the SAME prepared operands."""
    operands, meta = prepare_operands(xs, adjs, params, eps, nodes_per_group, graphs_per_group)
    (x_all, adj_all, pool_all, w1, b1, w2, b2, l1w, l1b, l2w, l2b) = operands
    tm, tg, c = meta["tm"], meta["tg"], meta["c"]
    outs = []
    for g in range(meta["n_groups"]):
        h = x_all[g * tm:(g + 1) * tm]
        adj = adj_all[g * tm:(g + 1) * tm]
        poolg = pool_all[g * tg:(g + 1) * tg]
        for layer in range(5):
            z = jnp.dot(adj, h, preferred_element_type=jnp.float32)
            z = jnp.dot(z.astype(jnp.bfloat16), w1[layer],
                        preferred_element_type=jnp.float32) + b1[layer]
            z = jnp.maximum(z, 0.0)
            z = jnp.dot(z.astype(jnp.bfloat16), w2[layer],
                        preferred_element_type=jnp.float32) + b2[layer]
            h = jnp.maximum(z, 0.0).astype(jnp.bfloat16)
        pooled = jnp.dot(poolg, h, preferred_element_type=jnp.float32)
        t = jnp.maximum(jnp.dot(pooled.astype(jnp.bfloat16), l1w,
                                preferred_element_type=jnp.float32) + l1b, 0.0)
        logits = jnp.dot(t.astype(jnp.bfloat16), l2w,
                         preferred_element_type=jnp.float32) + l2b
        m = jnp.max(logits, axis=-1, keepdims=True)
        lse = m + jnp.log(jnp.sum(jnp.exp(logits - m), axis=-1, keepdims=True))
        outs.append(logits - lse)
    out_full = jnp.concatenate(outs, axis=0)
    rows = jnp.asarray(meta["out_rows"], jnp.int32)
    return out_full[rows][:, :c]


def gin_forward_reference_f32(xs, adjs, params, eps=0.0):
    """Full-f32 pure-JAX forward mirroring the PyTorch module (eval mode)."""
    n_tot = sum(x.shape[0] for x in xs)
    x = jnp.concatenate(xs, axis=0)
    adj = jnp.zeros((n_tot, n_tot), jnp.float32)
    pool = jnp.zeros((len(xs), n_tot), jnp.float32)
    off = 0
    for i, a in enumerate(adjs):
        ni = a.shape[0]
        adj = adj.at[off:off + ni, off:off + ni].set(a)
        pool = pool.at[i, off:off + ni].set(1.0)
        off += ni
    h = x
    for layer in range(5):
        z = (1.0 + eps) * h + adj @ h
        if layer == 0:
            w1, b1 = params["w1_first"], params["b1_first"]
        else:
            w1, b1 = params["w1_rest"][layer - 1], params["b1_rest"][layer - 1]
        z = z @ w1 + b1
        z = ((z - params["bn_mean"][layer])
             / jnp.sqrt(params["bn_var"][layer] + BN_EPS)
             * params["bn_gamma"][layer] + params["bn_beta"][layer])
        z = jnp.maximum(z, 0.0)
        z = z @ params["w2_all"][layer] + params["b2_all"][layer]
        h = jnp.maximum(z, 0.0)
    pooled = pool @ h
    t = jnp.maximum(pooled @ params["lin1_w"] + params["lin1_b"], 0.0)
    logits = t @ params["lin2_w"] + params["lin2_b"]
    return jax.nn.log_softmax(logits, axis=-1)


def init_params(key, in_channels, dim, out_channels):
    ks = jax.random.split(key, 16)
    return {
        "w1_first": jax.random.normal(ks[0], (in_channels, dim), jnp.float32) * 0.1,
        "b1_first": jax.random.normal(ks[1], (1, dim), jnp.float32) * 0.01,
        "w1_rest":  jax.random.normal(ks[2], (4, dim, dim), jnp.float32) * 0.1,
        "b1_rest":  jax.random.normal(ks[3], (4, 1, dim), jnp.float32) * 0.01,
        # BatchNorm1d default init: gamma=1, beta=0, running_mean=0, running_var=1
        "bn_gamma": jnp.ones((5, 1, dim), jnp.float32),
        "bn_beta":  jnp.zeros((5, 1, dim), jnp.float32),
        "bn_mean":  jnp.zeros((5, 1, dim), jnp.float32),
        "bn_var":   jnp.ones((5, 1, dim), jnp.float32),
        "w2_all":   jax.random.normal(ks[4], (5, dim, dim), jnp.float32) * 0.1,
        "b2_all":   jax.random.normal(ks[5], (5, 1, dim), jnp.float32) * 0.01,
        "lin1_w":   jax.random.normal(ks[6], (dim, dim), jnp.float32) * 0.1,
        "lin1_b":   jax.random.normal(ks[7], (1, dim), jnp.float32) * 0.01,
        "lin2_w":   jax.random.normal(ks[8], (dim, out_channels), jnp.float32) * 0.1,
        "lin2_b":   jax.random.normal(ks[9], (1, out_channels), jnp.float32) * 0.01,
    }


if __name__ == "__main__":
    key = jax.random.PRNGKey(0)

    in_channels = 16
    dim = 32
    out_channels = 8
    num_graphs = 12
    nodes_per_graph = 16
    edges_per_graph = 40

    keys = jax.random.split(key, 1 + 2 * num_graphs)
    params = init_params(keys[0], in_channels, dim, out_channels)

    xs, adjs = [], []
    for gi in range(num_graphs):
        kx, ke = keys[1 + 2 * gi], keys[2 + 2 * gi]
        xg = jax.random.normal(kx, (nodes_per_graph, in_channels), jnp.float32)
        ei = jax.random.randint(ke, (2, edges_per_graph), 0, nodes_per_graph)
        # dense adjacency: aggr[d] = sum over edges (s -> d) of x[s]  =>  A[d, s] += 1
        ag = jnp.zeros((nodes_per_graph, nodes_per_graph),
                       jnp.float32).at[ei[1], ei[0]].add(1.0)
        xs.append(xg)
        adjs.append(ag)

    # 12 graphs x 16 nodes, packed 8 graphs / 128 nodes per group -> 2 groups -> grid=(2,)
    out = gin_forward_pallas(xs, adjs, params, nodes_per_group=128, graphs_per_group=8)
    out = jax.block_until_ready(out)
    assert out.shape == (num_graphs, out_channels)

    # Tight check: kernel vs a plain-JAX mirror of the exact same grouped/folded/bf16 math.
    ref_mirror = gin_forward_prepared_reference(xs, adjs, params,
                                                nodes_per_group=128, graphs_per_group=8)
    assert jnp.allclose(out, ref_mirror, rtol=1e-4, atol=1e-4), \
        "Pallas output mismatch vs prepared-operand reference"

    # Semantics check: kernel vs the full-f32 PyTorch-faithful forward
    # (loose tolerance accounts only for the bf16 MXU inputs).
    ref_f32 = gin_forward_reference_f32(xs, adjs, params)
    assert jnp.allclose(out, ref_f32, rtol=3e-2, atol=3e-2), \
        "Pallas output mismatch vs f32 reference"

    print("KERNEL_OK")
</pallas_src>

<mosaic_0001>
module attributes {stable_mosaic.version = 11 : i64} {
  func.func @_gin_kernel(%arg0: i32, %arg1: memref<128x128xbf16, #tpu.memory_space<vmem>>, %arg2: memref<128x128xbf16, #tpu.memory_space<vmem>>, %arg3: memref<8x128xbf16, #tpu.memory_space<vmem>>, %arg4: memref<5x128x128xbf16, #tpu.memory_space<vmem>>, %arg5: memref<5x1x128xf32, #tpu.memory_space<vmem>>, %arg6: memref<5x128x128xbf16, #tpu.memory_space<vmem>>, %arg7: memref<5x1x128xf32, #tpu.memory_space<vmem>>, %arg8: memref<128x128xbf16, #tpu.memory_space<vmem>>, %arg9: memref<1x128xf32, #tpu.memory_space<vmem>>, %arg10: memref<128x128xbf16, #tpu.memory_space<vmem>>, %arg11: memref<1x128xf32, #tpu.memory_space<vmem>>, %arg12: memref<8x128xf32, #tpu.memory_space<vmem>>) attributes {dimension_semantics = [#tpu.dimension_semantics<parallel>], iteration_bounds = array<i64: 2>, scalar_prefetch = 0 : i64, scratch_operands = 0 : i64, tpu.core_type = #tpu.core_type<tc>, window_params = [{transform_indices = @transform_0, window_bounds = array<i64: 128, 128>}, {transform_indices = @transform_1, window_bounds = array<i64: 128, 128>}, {transform_indices = @transform_2, window_bounds = array<i64: 8, 128>}, {pipeline_mode = #tpu.pipeline_mode<synchronous>, transform_indices = @transform_3, window_bounds = array<i64: 5, 128, 128>}, {pipeline_mode = #tpu.pipeline_mode<synchronous>, transform_indices = @transform_4, window_bounds = array<i64: 5, 1, 128>}, {pipeline_mode = #tpu.pipeline_mode<synchronous>, transform_indices = @transform_5, window_bounds = array<i64: 5, 128, 128>}, {pipeline_mode = #tpu.pipeline_mode<synchronous>, transform_indices = @transform_6, window_bounds = array<i64: 5, 1, 128>}, {pipeline_mode = #tpu.pipeline_mode<synchronous>, transform_indices = @transform_7, window_bounds = array<i64: 128, 128>}, {pipeline_mode = #tpu.pipeline_mode<synchronous>, transform_indices = @transform_8, window_bounds = array<i64: 1, 128>}, {pipeline_mode = #tpu.pipeline_mode<synchronous>, transform_indices = @transform_9, window_bounds = array<i64: 128, 128>}, {pipeline_mode = #tpu.pipeline_mode<synchronous>, transform_indices = @transform_10, window_bounds = array<i64: 1, 128>}, {transform_indices = @transform_11, window_bounds = array<i64: 8, 128>}]} {
    %c0 = arith.constant 0 : index
    %c0_0 = arith.constant 0 : index
    %0 = vector.load %arg2[%c0, %c0_0] : memref<128x128xbf16, #tpu.memory_space<vmem>>, vector<128x128xbf16>
    %c0_1 = arith.constant 0 : index
    %c0_2 = arith.constant 0 : index
    %1 = vector.load %arg1[%c0_1, %c0_2] : memref<128x128xbf16, #tpu.memory_space<vmem>>, vector<128x128xbf16>
    %cst = arith.constant dense<0.000000e+00> : vector<128x128xf32>
    %2 = tpu.matmul %0, %1, %cst {dimension_numbers = #tpu.dot_dimension_numbers<[1], [0], [0], [1], [0, 0, 1, 1], [], []>} : vector<128x128xbf16>, vector<128x128xbf16>, vector<128x128xf32> -> vector<128x128xf32>
    %3 = arith.truncf %2 : vector<128x128xf32> to vector<128x128xbf16>
    %c0_3 = arith.constant 0 : index
    %c0_4 = arith.constant 0 : index
    %c0_5 = arith.constant 0 : index
    %4 = vector.load %arg4[%c0_3, %c0_4, %c0_5] : memref<5x128x128xbf16, #tpu.memory_space<vmem>>, vector<1x128x128xbf16>
    %5 = vector.shape_cast %4 : vector<1x128x128xbf16> to vector<128x128xbf16>
    %cst_6 = arith.constant dense<0.000000e+00> : vector<128x128xf32>
    %6 = tpu.matmul %3, %5, %cst_6 {dimension_numbers = #tpu.dot_dimension_numbers<[1], [0], [0], [1], [0, 0, 1, 1], [], []>} : vector<128x128xbf16>, vector<128x128xbf16>, vector<128x128xf32> -> vector<128x128xf32>
    %c0_7 = arith.constant 0 : index
    %c0_8 = arith.constant 0 : index
    %c0_9 = arith.constant 0 : index
    %7 = vector.load %arg5[%c0_7, %c0_8, %c0_9] : memref<5x1x128xf32, #tpu.memory_space<vmem>>, vector<1x1x128xf32>
    %8 = vector.shape_cast %7 : vector<1x1x128xf32> to vector<1x128xf32>
    %9 = vector.broadcast %8 : vector<1x128xf32> to vector<128x128xf32>
    %10 = arith.addf %6, %9 : vector<128x128xf32>
    %cst_10 = arith.constant 0.000000e+00 : f32
    %11 = vector.broadcast %cst_10 : f32 to vector<128x128xf32>
    %12 = arith.maximumf %10, %11 : vector<128x128xf32>
    %13 = arith.truncf %12 : vector<128x128xf32> to vector<128x128xbf16>
    %c0_11 = arith.constant 0 : index
    %c0_12 = arith.constant 0 : index
    %c0_13 = arith.constant 0 : index
    %14 = vector.load %arg6[%c0_11, %c0_12, %c0_13] : memref<5x128x128xbf16, #tpu.memory_space<vmem>>, vector<1x128x128xbf16>
    %15 = vector.shape_cast %14 : vector<1x128x128xbf16> to vector<128x128xbf16>
    %cst_14 = arith.constant dense<0.000000e+00> : vector<128x128xf32>
    %16 = tpu.matmul %13, %15, %cst_14 {dimension_numbers = #tpu.dot_dimension_numbers<[1], [0], [0], [1], [0, 0, 1, 1], [], []>} : vector<128x128xbf16>, vector<128x128xbf16>, vector<128x128xf32> -> vector<128x128xf32>
    %c0_15 = arith.constant 0 : index
    %c0_16 = arith.constant 0 : index
    %c0_17 = arith.constant 0 : index
    %17 = vector.load %arg7[%c0_15, %c0_16, %c0_17] : memref<5x1x128xf32, #tpu.memory_space<vmem>>, vector<1x1x128xf32>
    %18 = vector.shape_cast %17 : vector<1x1x128xf32> to vector<1x128xf32>
    %19 = vector.broadcast %18 : vector<1x128xf32> to vector<128x128xf32>
    %20 = arith.addf %16, %19 : vector<128x128xf32>
    %cst_18 = arith.constant 0.000000e+00 : f32
    %21 = vector.broadcast %cst_18 : f32 to vector<128x128xf32>
    %22 = arith.maximumf %20, %21 : vector<128x128xf32>
    %23 = arith.truncf %22 : vector<128x128xf32> to vector<128x128xbf16>
    %cst_19 = arith.constant dense<0.000000e+00> : vector<128x128xf32>
    %24 = tpu.matmul %0, %23, %cst_19 {dimension_numbers = #tpu.dot_dimension_numbers<[1], [0], [0], [1], [0, 0, 1, 1], [], []>} : vector<128x128xbf16>, vector<128x128xbf16>, vector<128x128xf32> -> vector<128x128xf32>
    %25 = arith.truncf %24 : vector<128x128xf32> to vector<128x128xbf16>
    %c1 = arith.constant 1 : index
    %c0_20 = arith.constant 0 : index
    %c0_21 = arith.constant 0 : index
    %26 = vector.load %arg4[%c1, %c0_20, %c0_21] : memref<5x128x128xbf16, #tpu.memory_space<vmem>>, vector<1x128x128xbf16>
    %27 = vector.shape_cast %26 : vector<1x128x128xbf16> to vector<128x128xbf16>
    %cst_22 = arith.constant dense<0.000000e+00> : vector<128x128xf32>
    %28 = tpu.matmul %25, %27, %cst_22 {dimension_numbers = #tpu.dot_dimension_numbers<[1], [0], [0], [1], [0, 0, 1, 1], [], []>} : vector<128x128xbf16>, vector<128x128xbf16>, vector<128x128xf32> -> vector<128x128xf32>
    %c1_23 = arith.constant 1 : index
    %c0_24 = arith.constant 0 : index
    %c0_25 = arith.constant 0 : index
    %29 = vector.load %arg5[%c1_23, %c0_24, %c0_25] : memref<5x1x128xf32, #tpu.memory_space<vmem>>, vector<1x1x128xf32>
    %30 = vector.shape_cast %29 : vector<1x1x128xf32> to vector<1x128xf32>
    %31 = vector.broadcast %30 : vector<1x128xf32> to vector<128x128xf32>
    %32 = arith.addf %28, %31 : vector<128x128xf32>
    %cst_26 = arith.constant 0.000000e+00 : f32
    %33 = vector.broadcast %cst_26 : f32 to vector<128x128xf32>
    %34 = arith.maximumf %32, %33 : vector<128x128xf32>
    %35 = arith.truncf %34 : vector<128x128xf32> to vector<128x128xbf16>
    %c1_27 = arith.constant 1 : index
    %c0_28 = arith.constant 0 : index
    %c0_29 = arith.constant 0 : index
    %36 = vector.load %arg6[%c1_27, %c0_28, %c0_29] : memref<5x128x128xbf16, #tpu.memory_space<vmem>>, vector<1x128x128xbf16>
    %37 = vector.shape_cast %36 : vector<1x128x128xbf16> to vector<128x128xbf16>
    %cst_30 = arith.constant dense<0.000000e+00> : vector<128x128xf32>
    %38 = tpu.matmul %35, %37, %cst_30 {dimension_numbers = #tpu.dot_dimension_numbers<[1], [0], [0], [1], [0, 0, 1, 1], [], []>} : vector<128x128xbf16>, vector<128x128xbf16>, vector<128x128xf32> -> vector<128x128xf32>
    %c1_31 = arith.constant 1 : index
    %c0_32 = arith.constant 0 : index
    %c0_33 = arith.constant 0 : index
    %39 = vector.load %arg7[%c1_31, %c0_32, %c0_33] : memref<5x1x128xf32, #tpu.memory_space<vmem>>, vector<1x1x128xf32>
    %40 = vector.shape_cast %39 : vector<1x1x128xf32> to vector<1x128xf32>
    %41 = vector.broadcast %40 : vector<1x128xf32> to vector<128x128xf32>
    %42 = arith.addf %38, %41 : vector<128x128xf32>
    %cst_34 = arith.constant 0.000000e+00 : f32
    %43 = vector.broadcast %cst_34 : f32 to vector<128x128xf32>
    %44 = arith.maximumf %42, %43 : vector<128x128xf32>
    %45 = arith.truncf %44 : vector<128x128xf32> to vector<128x128xbf16>
    %cst_35 = arith.constant dense<0.000000e+00> : vector<128x128xf32>
    %46 = tpu.matmul %0, %45, %cst_35 {dimension_numbers = #tpu.dot_dimension_numbers<[1], [0], [0], [1], [0, 0, 1, 1], [], []>} : vector<128x128xbf16>, vector<128x128xbf16>, vector<128x128xf32> -> vector<128x128xf32>
    %47 = arith.truncf %46 : vector<128x128xf32> to vector<128x128xbf16>
    %c2 = arith.constant 2 : index
    %c0_36 = arith.constant 0 : index
    %c0_37 = arith.constant 0 : index
    %48 = vector.load %arg4[%c2, %c0_36, %c0_37] : memref<5x128x128xbf16, #tpu.memory_space<vmem>>, vector<1x128x128xbf16>
    %49 = vector.shape_cast %48 : vector<1x128x128xbf16> to vector<128x128xbf16>
    %cst_38 = arith.constant dense<0.000000e+00> : vector<128x128xf32>
    %50 = tpu.matmul %47, %49, %cst_38 {dimension_numbers = #tpu.dot_dimension_numbers<[1], [0], [0], [1], [0, 0, 1, 1], [], []>} : vector<128x128xbf16>, vector<128x128xbf16>, vector<128x128xf32> -> vector<128x128xf32>
    %c2_39 = arith.constant 2 : index
    %c0_40 = arith.constant 0 : index
    %c0_41 = arith.constant 0 : index
    %51 = vector.load %arg5[%c2_39, %c0_40, %c0_41] : memref<5x1x128xf32, #tpu.memory_space<vmem>>, vector<1x1x128xf32>
    %52 = vector.shape_cast %51 : vector<1x1x128xf32> to vector<1x128xf32>
    %53 = vector.broadcast %52 : vector<1x128xf32> to vector<128x128xf32>
    %54 = arith.addf %50, %53 : vector<128x128xf32>
    %cst_42 = arith.constant 0.000000e+00 : f32
    %55 = vector.broadcast %cst_42 : f32 to vector<128x128xf32>
    %56 = arith.maximumf %54, %55 : vector<128x128xf32>
    %57 = arith.truncf %56 : vector<128x128xf32> to vector<128x128xbf16>
    %c2_43 = arith.constant 2 : index
    %c0_44 = arith.constant 0 : index
    %c0_45 = arith.constant 0 : index
    %58 = vector.load %arg6[%c2_43, %c0_44, %c0_45] : memref<5x128x128xbf16, #tpu.memory_space<vmem>>, vector<1x128x128xbf16>
    %59 = vector.shape_cast %58 : vector<1x128x128xbf16> to vector<128x128xbf16>
    %cst_46 = arith.constant dense<0.000000e+00> : vector<128x128xf32>
    %60 = tpu.matmul %57, %59, %cst_46 {dimension_numbers = #tpu.dot_dimension_numbers<[1], [0], [0], [1], [0, 0, 1, 1], [], []>} : vector<128x128xbf16>, vector<128x128xbf16>, vector<128x128xf32> -> vector<128x128xf32>
    %c2_47 = arith.constant 2 : index
    %c0_48 = arith.constant 0 : index
    %c0_49 = arith.constant 0 : index
    %61 = vector.load %arg7[%c2_47, %c0_48, %c0_49] : memref<5x1x128xf32, #tpu.memory_space<vmem>>, vector<1x1x128xf32>
    %62 = vector.shape_cast %61 : vector<1x1x128xf32> to vector<1x128xf32>
    %63 = vector.broadcast %62 : vector<1x128xf32> to vector<128x128xf32>
    %64 = arith.addf %60, %63 : vector<128x128xf32>
    %cst_50 = arith.constant 0.000000e+00 : f32
    %65 = vector.broadcast %cst_50 : f32 to vector<128x128xf32>
    %66 = arith.maximumf %64, %65 : vector<128x128xf32>
    %67 = arith.truncf %66 : vector<128x128xf32> to vector<128x128xbf16>
    %cst_51 = arith.constant dense<0.000000e+00> : vector<128x128xf32>
    %68 = tpu.matmul %0, %67, %cst_51 {dimension_numbers = #tpu.dot_dimension_numbers<[1], [0], [0], [1], [0, 0, 1, 1], [], []>} : vector<128x128xbf16>, vector<128x128xbf16>, vector<128x128xf32> -> vector<128x128xf32>
    %69 = arith.truncf %68 : vector<128x128xf32> to vector<128x128xbf16>
    %c3 = arith.constant 3 : index
    %c0_52 = arith.constant 0 : index
    %c0_53 = arith.constant 0 : index
    %70 = vector.load %arg4[%c3, %c0_52, %c0_53] : memref<5x128x128xbf16, #tpu.memory_space<vmem>>, vector<1x128x128xbf16>
    %71 = vector.shape_cast %70 : vector<1x128x128xbf16> to vector<128x128xbf16>
    %cst_54 = arith.constant dense<0.000000e+00> : vector<128x128xf32>
    %72 = tpu.matmul %69, %71, %cst_54 {dimension_numbers = #tpu.dot_dimension_numbers<[1], [0], [0], [1], [0, 0, 1, 1], [], []>} : vector<128x128xbf16>, vector<128x128xbf16>, vector<128x128xf32> -> vector<128x128xf32>
    %c3_55 = arith.constant 3 : index
    %c0_56 = arith.constant 0 : index
    %c0_57 = arith.constant 0 : index
    %73 = vector.load %arg5[%c3_55, %c0_56, %c0_57] : memref<5x1x128xf32, #tpu.memory_space<vmem>>, vector<1x1x128xf32>
    %74 = vector.shape_cast %73 : vector<1x1x128xf32> to vector<1x128xf32>
    %75 = vector.broadcast %74 : vector<1x128xf32> to vector<128x128xf32>
    %76 = arith.addf %72, %75 : vector<128x128xf32>
    %cst_58 = arith.constant 0.000000e+00 : f32
    %77 = vector.broadcast %cst_58 : f32 to vector<128x128xf32>
    %78 = arith.maximumf %76, %77 : vector<128x128xf32>
    %79 = arith.truncf %78 : vector<128x128xf32> to vector<128x128xbf16>
    %c3_59 = arith.constant 3 : index
    %c0_60 = arith.constant 0 : index
    %c0_61 = arith.constant 0 : index
    %80 = vector.load %arg6[%c3_59, %c0_60, %c0_61] : memref<5x128x128xbf16, #tpu.memory_space<vmem>>, vector<1x128x128xbf16>
    %81 = vector.shape_cast %80 : vector<1x128x128xbf16> to vector<128x128xbf16>
    %cst_62 = arith.constant dense<0.000000e+00> : vector<128x128xf32>
    %82 = tpu.matmul %79, %81, %cst_62 {dimension_numbers = #tpu.dot_dimension_numbers<[1], [0], [0], [1], [0, 0, 1, 1], [], []>} : vector<128x128xbf16>, vector<128x128xbf16>, vector<128x128xf32> -> vector<128x128xf32>
    %c3_63 = arith.constant 3 : index
    %c0_64 = arith.constant 0 : index
    %c0_65 = arith.constant 0 : index
    %83 = vector.load %arg7[%c3_63, %c0_64, %c0_65] : memref<5x1x128xf32, #tpu.memory_space<vmem>>, vector<1x1x128xf32>
    %84 = vector.shape_cast %83 : vector<1x1x128xf32> to vector<1x128xf32>
    %85 = vector.broadcast %84 : vector<1x128xf32> to vector<128x128xf32>
    %86 = arith.addf %82, %85 : vector<128x128xf32>
    %cst_66 = arith.constant 0.000000e+00 : f32
    %87 = vector.broadcast %cst_66 : f32 to vector<128x128xf32>
    %88 = arith.maximumf %86, %87 : vector<128x128xf32>
    %89 = arith.truncf %88 : vector<128x128xf32> to vector<128x128xbf16>
    %cst_67 = arith.constant dense<0.000000e+00> : vector<128x128xf32>
    %90 = tpu.matmul %0, %89, %cst_67 {dimension_numbers = #tpu.dot_dimension_numbers<[1], [0], [0], [1], [0, 0, 1, 1], [], []>} : vector<128x128xbf16>, vector<128x128xbf16>, vector<128x128xf32> -> vector<128x128xf32>
    %91 = arith.truncf %90 : vector<128x128xf32> to vector<128x128xbf16>
    %c4 = arith.constant 4 : index
    %c0_68 = arith.constant 0 : index
    %c0_69 = arith.constant 0 : index
    %92 = vector.load %arg4[%c4, %c0_68, %c0_69] : memref<5x128x128xbf16, #tpu.memory_space<vmem>>, vector<1x128x128xbf16>
    %93 = vector.shape_cast %92 : vector<1x128x128xbf16> to vector<128x128xbf16>
    %cst_70 = arith.constant dense<0.000000e+00> : vector<128x128xf32>
    %94 = tpu.matmul %91, %93, %cst_70 {dimension_numbers = #tpu.dot_dimension_numbers<[1], [0], [0], [1], [0, 0, 1, 1], [], []>} : vector<128x128xbf16>, vector<128x128xbf16>, vector<128x128xf32> -> vector<128x128xf32>
    %c4_71 = arith.constant 4 : index
    %c0_72 = arith.constant 0 : index
    %c0_73 = arith.constant 0 : index
    %95 = vector.load %arg5[%c4_71, %c0_72, %c0_73] : memref<5x1x128xf32, #tpu.memory_space<vmem>>, vector<1x1x128xf32>
    %96 = vector.shape_cast %95 : vector<1x1x128xf32> to vector<1x128xf32>
    %97 = vector.broadcast %96 : vector<1x128xf32> to vector<128x128xf32>
    %98 = arith.addf %94, %97 : vector<128x128xf32>
    %cst_74 = arith.constant 0.000000e+00 : f32
    %99 = vector.broadcast %cst_74 : f32 to vector<128x128xf32>
    %100 = arith.maximumf %98, %99 : vector<128x128xf32>
    %101 = arith.truncf %100 : vector<128x128xf32> to vector<128x128xbf16>
    %c4_75 = arith.constant 4 : index
    %c0_76 = arith.constant 0 : index
    %c0_77 = arith.constant 0 : index
    %102 = vector.load %arg6[%c4_75, %c0_76, %c0_77] : memref<5x128x128xbf16, #tpu.memory_space<vmem>>, vector<1x128x128xbf16>
    %103 = vector.shape_cast %102 : vector<1x128x128xbf16> to vector<128x128xbf16>
    %cst_78 = arith.constant dense<0.000000e+00> : vector<128x128xf32>
    %104 = tpu.matmul %101, %103, %cst_78 {dimension_numbers = #tpu.dot_dimension_numbers<[1], [0], [0], [1], [0, 0, 1, 1], [], []>} : vector<128x128xbf16>, vector<128x128xbf16>, vector<128x128xf32> -> vector<128x128xf32>
    %c4_79 = arith.constant 4 : index
    %c0_80 = arith.constant 0 : index
    %c0_81 = arith.constant 0 : index
    %105 = vector.load %arg7[%c4_79, %c0_80, %c0_81] : memref<5x1x128xf32, #tpu.memory_space<vmem>>, vector<1x1x128xf32>
    %106 = vector.shape_cast %105 : vector<1x1x128xf32> to vector<1x128xf32>
    %107 = vector.broadcast %106 : vector<1x128xf32> to vector<128x128xf32>
    %108 = arith.addf %104, %107 : vector<128x128xf32>
    %cst_82 = arith.constant 0.000000e+00 : f32
    %109 = vector.broadcast %cst_82 : f32 to vector<128x128xf32>
    %110 = arith.maximumf %108, %109 : vector<128x128xf32>
    %111 = arith.truncf %110 : vector<128x128xf32> to vector<128x128xbf16>
    %c0_83 = arith.constant 0 : index
    %c0_84 = arith.constant 0 : index
    %112 = vector.load %arg3[%c0_83, %c0_84] : memref<8x128xbf16, #tpu.memory_space<vmem>>, vector<8x128xbf16>
    %cst_85 = arith.constant dense<0.000000e+00> : vector<8x128xf32>
    %113 = tpu.matmul %112, %111, %cst_85 {dimension_numbers = #tpu.dot_dimension_numbers<[1], [0], [0], [1], [0, 0, 1, 1], [], []>} : vector<8x128xbf16>, vector<128x128xbf16>, vector<8x128xf32> -> vector<8x128xf32>
    %114 = arith.truncf %113 : vector<8x128xf32> to vector<8x128xbf16>
    %c0_86 = arith.constant 0 : index
    %c0_87 = arith.constant 0 : index
    %115 = vector.load %arg8[%c0_86, %c0_87] : memref<128x128xbf16, #tpu.memory_space<vmem>>, vector<128x128xbf16>
    %cst_88 = arith.constant dense<0.000000e+00> : vector<8x128xf32>
    %116 = tpu.matmul %114, %115, %cst_88 {dimension_numbers = #tpu.dot_dimension_numbers<[1], [0], [0], [1], [0, 0, 1, 1], [], []>} : vector<8x128xbf16>, vector<128x128xbf16>, vector<8x128xf32> -> vector<8x128xf32>
    %c0_89 = arith.constant 0 : index
    %c0_90 = arith.constant 0 : index
    %117 = vector.load %arg9[%c0_89, %c0_90] : memref<1x128xf32, #tpu.memory_space<vmem>>, vector<1x128xf32>
    %118 = vector.broadcast %117 : vector<1x128xf32> to vector<8x128xf32>
    %119 = arith.addf %116, %118 : vector<8x128xf32>
    %cst_91 = arith.constant 0.000000e+00 : f32
    %120 = vector.broadcast %cst_91 : f32 to vector<8x128xf32>
    %121 = arith.maximumf %119, %120 : vector<8x128xf32>
    %122 = arith.truncf %121 : vector<8x128xf32> to vector<8x128xbf16>
    %c0_92 = arith.constant 0 : index
    %c0_93 = arith.constant 0 : index
    %123 = vector.load %arg10[%c0_92, %c0_93] : memref<128x128xbf16, #tpu.memory_space<vmem>>, vector<128x128xbf16>
    %cst_94 = arith.constant dense<0.000000e+00> : vector<8x128xf32>
    %124 = tpu.matmul %122, %123, %cst_94 {dimension_numbers = #tpu.dot_dimension_numbers<[1], [0], [0], [1], [0, 0, 1, 1], [], []>} : vector<8x128xbf16>, vector<128x128xbf16>, vector<8x128xf32> -> vector<8x128xf32>
    %c0_95 = arith.constant 0 : index
    %c0_96 = arith.constant 0 : index
    %125 = vector.load %arg11[%c0_95, %c0_96] : memref<1x128xf32, #tpu.memory_space<vmem>>, vector<1x128xf32>
    %126 = vector.broadcast %125 : vector<1x128xf32> to vector<8x128xf32>
    %127 = arith.addf %124, %126 : vector<8x128xf32>
    %cst_97 = arith.constant dense<0xFF800000> : vector<8xf32>
    %128 = vector.multi_reduction <maximumf>, %127, %cst_97 [1] : vector<8x128xf32> to vector<8xf32>
    %129 = vector.shape_cast %128 : vector<8xf32> to vector<8x1xf32>
    %130 = vector.broadcast %129 : vector<8x1xf32> to vector<8x128xf32>
    %131 = arith.subf %127, %130 : vector<8x128xf32>
    %132 = math.exp %131 : vector<8x128xf32>
    %cst_98 = arith.constant dense<0.000000e+00> : vector<8xf32>
    %133 = vector.multi_reduction <add>, %132, %cst_98 [1] : vector<8x128xf32> to vector<8xf32>
    %134 = vector.shape_cast %133 : vector<8xf32> to vector<8x1xf32>
    %135 = math.log %134 : vector<8x1xf32>
    %136 = arith.addf %129, %135 : vector<8x1xf32>
    %137 = vector.broadcast %136 : vector<8x1xf32> to vector<8x128xf32>
    %138 = arith.subf %127, %137 : vector<8x128xf32>
    %c0_99 = arith.constant 0 : index
    %c0_100 = arith.constant 0 : index
    %139 = vector.load %arg12[%c0_99, %c0_100] : memref<8x128xf32, #tpu.memory_space<vmem>>, vector<8x128xf32>
    tpu.vector_store %arg12[%c0_99, %c0_100], %138 {strides = array<i32>} : memref<8x128xf32, #tpu.memory_space<vmem>>, vector<8x128xf32>,
    return
  }
  func.func @transform_0(%arg0: i32) -> (i32, i32) {
    %c0_i32 = arith.constant 0 : i32
    %c0_i32_0 = arith.constant 0 : i32
    return %arg0, %c0_i32 : i32, i32
  }
  func.func @transform_1(%arg0: i32) -> (i32, i32) {
    %c0_i32 = arith.constant 0 : i32
    %c0_i32_0 = arith.constant 0 : i32
    return %arg0, %c0_i32 : i32, i32
  }
  func.func @transform_2(%arg0: i32) -> (i32, i32) {
    %c0_i32 = arith.constant 0 : i32
    %c0_i32_0 = arith.constant 0 : i32
    return %arg0, %c0_i32 : i32, i32
  }
  func.func @transform_3(%arg0: i32) -> (i32, i32, i32) {
    %c0_i32 = arith.constant 0 : i32
    %c0_i32_0 = arith.constant 0 : i32
    %c0_i32_1 = arith.constant 0 : i32
    %c0_i32_2 = arith.constant 0 : i32
    return %c0_i32, %c0_i32_0, %c0_i32_1 : i32, i32, i32
  }
  func.func @transform_4(%arg0: i32) -> (i32, i32, i32) {
    %c0_i32 = arith.constant 0 : i32
    %c0_i32_0 = arith.constant 0 : i32
    %c0_i32_1 = arith.constant 0 : i32
    %c0_i32_2 = arith.constant 0 : i32
    return %c0_i32, %c0_i32_0, %c0_i32_1 : i32, i32, i32
  }
  func.func @transform_5(%arg0: i32) -> (i32, i32, i32) {
    %c0_i32 = arith.constant 0 : i32
    %c0_i32_0 = arith.constant 0 : i32
    %c0_i32_1 = arith.constant 0 : i32
    %c0_i32_2 = arith.constant 0 : i32
    return %c0_i32, %c0_i32_0, %c0_i32_1 : i32, i32, i32
  }
  func.func @transform_6(%arg0: i32) -> (i32, i32, i32) {
    %c0_i32 = arith.constant 0 : i32
    %c0_i32_0 = arith.constant 0 : i32
    %c0_i32_1 = arith.constant 0 : i32
    %c0_i32_2 = arith.constant 0 : i32
    return %c0_i32, %c0_i32_0, %c0_i32_1 : i32, i32, i32
  }
  func.func @transform_7(%arg0: i32) -> (i32, i32) {
    %c0_i32 = arith.constant 0 : i32
    %c0_i32_0 = arith.constant 0 : i32
    %c0_i32_1 = arith.constant 0 : i32
    return %c0_i32, %c0_i32_0 : i32, i32
  }
  func.func @transform_8(%arg0: i32) -> (i32, i32) {
    %c0_i32 = arith.constant 0 : i32
    %c0_i32_0 = arith.constant 0 : i32
    %c0_i32_1 = arith.constant 0 : i32
    return %c0_i32, %c0_i32_0 : i32, i32
  }
  func.func @transform_9(%arg0: i32) -> (i32, i32) {
    %c0_i32 = arith.constant 0 : i32
    %c0_i32_0 = arith.constant 0 : i32
    %c0_i32_1 = arith.constant 0 : i32
    return %c0_i32, %c0_i32_0 : i32, i32
  }
  func.func @transform_10(%arg0: i32) -> (i32, i32) {
    %c0_i32 = arith.constant 0 : i32
    %c0_i32_0 = arith.constant 0 : i32
    %c0_i32_1 = arith.constant 0 : i32
    return %c0_i32, %c0_i32_0 : i32, i32
  }
  func.func @transform_11(%arg0: i32) -> (i32, i32) {
    %c0_i32 = arith.constant 0 : i32
    %c0_i32_0 = arith.constant 0 : i32
    return %arg0, %c0_i32 : i32, i32
  }
}

</mosaic_0001>

<bundles_post_ra>
// kernel: tpu_custom_call.1
= control target key start
LH: loop header
LB: loop body
LE: loop exit
PB: predicated region body
PF: predicated region fallthrough
CT: control target
= control target key end

     0   :  { %s4262_s0 = inlined_call_operand.hbm [shape: bf16[256,128], index: 0, kind: input, shape index: {}]   ;;  %s4263_s1 = inlined_call_operand.hbm [shape: bf16[256,128], index: 1, kind: input, shape index: {}]   ;;  %s4264_s2 = inlined_call_operand.hbm [shape: bf16[16,128], index: 2, kind: input, shape index: {}]   ;;  %s4265_s3 = inlined_call_operand.hbm [shape: bf16[5,128,128], index: 3, kind: input, shape index: {}]   ;;  %s4266_s4 = inlined_call_operand.hbm [shape: f32[5,1,128], index: 4, kind: input, shape index: {}]   ;;  %s4267_s5 = inlined_call_operand.hbm [shape: bf16[5,128,128], index: 5, kind: input, shape index: {}]   ;;  %s4268_s6 = inlined_call_operand.vmem [shape: f32[5,1,128], index: 6, kind: input, shape index: {}]   ;;  %s4269_s7 = inlined_call_operand.hbm [shape: bf16[128,128], index: 7, kind: input, shape index: {}]   ;;  %s4270_s8 = inlined_call_operand.vmem [shape: f32[1,128], index: 8, kind: input, shape index: {}]   ;;  %s4271_s9 = inlined_call_operand.hbm [shape: bf16[128,128], index: 9, kind: input, shape index: {}]   ;;  %s4272_s10 = inlined_call_operand.vmem [shape: f32[1,128], index: 10, kind: input, shape index: {}]   ;;  %s4273_s11 = inlined_call_operand.hbm [shape: f32[16,128], index: 11, kind: output, shape index: {}]  }
   0x1   :  { %4289 = sst [smem:[#allocation29_spill]] %s4263_s1 }
   0x2   :  { %4290 = sst [smem:[#allocation30_spill]] %s4265_s3 }
   0x3   :  { %4291 = sst [smem:[#allocation31_spill]] %s4266_s4 }
   0x4   :  { %4292 = sst [smem:[#allocation32_spill]] %s4267_s5 }
   0x5   :  { %4293 = sst [smem:[#allocation33_spill]] %s4273_s11 }
   0x6   :  { %16 = vsyncpa [#allocation3], 0 }
   0x7   :  { %18 = vsyncpa [#allocation3 + $0x1], 0 }
   0x8   :  { %19 = vsyncpa [#allocation6], 0 }
   0x9   :  { %21 = vsyncpa [#allocation6 + $0x1], 0 }
   0xa   :  { %22 = vsyncpa [#allocation9], 0 }
   0xb   :  { %23 = vsyncpa [#allocation12], 0 }
   0xc   :  { %24 = vsyncpa [#allocation15], 0 }
   0xd   :  { %25 = vsyncpa [#allocation4], 0 }
   0xe   :  { %27 = vsyncpa [#allocation4 + $0x1], 0  ;;  %s3901_s17 = smov 0   ;;  %s3903_s18 = smov 0  }
   0xf   :  { %s3905_s19 = smov 0   ;;  %s3907_s20 = smov 0  }
  0x10 LB: > { %4294 = sst [smem:[#allocation23_spill]] %s3818_s17  ;;  %s3925_s24 = sadd.s32 4294967295, %s3830_s20   ;;  %s3830_s20 = sphi %s3907_s20, %s4326_s20   ;;  %s3826_s19 = sphi %s3905_s19, %s4328_s19   ;;  %s3822_s18 = sphi %s3903_s18, %s4330_s18   ;;  %s3818_s17 = sphi %s3901_s17, %s4329_s17  }
  0x11   : > { %4295 = sst [smem:[#allocation24_spill]] %s3826_s19  ;;  %p2778_p0 = scmp.ge.s32.totalorder %s3830_s20, 1 }
  0x12   : > { %s4296_s3 = sld [smem:[#allocation30_spill]]  ;;  %p4284_p1 = scmp.eq.s32.totalorder %s3925_s24, 0 }
  0x13   : > { %p297_p2 = scmp.eq.s32.totalorder %s3925_s24, 1  ;;  %p310_p3 = scmp.lt.s32.totalorder %s3830_s20, 3 }
  0x14   : > { %s3832_s26 = smov [#allocation8]   ;;  %s4298_s5 = sld [smem:[#allocation32_spill]] }
  0x15   : > { %p3931_p4 = pnand %p2778_p0, %p310_p3  ;;  %s323_s27 = sshll.u32 %s3832_s26, 4  ;;  %s324_s27 = int_to_ptr.vmem [resolvable:$true] %s323_s27 }
  0x16   : > { %s3833_s13 = smov [#allocation11]   ;;  %s4274_s15 = smov 64  }
  0x17   : > { %p3401_p5 = pneg %p3931_p4  ;;  %s351_s14 = sshll.u32 %s3833_s13, 4  ;;  %s352_s14 = int_to_ptr.vmem [resolvable:$true] %s351_s14 }
  0x18   : > { %s321_s23 = sshll.u32 %s4296_s3, 4  ;;  %s4276_s16 = smov 4   ;;  %s322_s23 = int_to_ptr.hbm [resolvable:$true] %s321_s23 }
  0x19   : > { %p3943_p7 = pnand %p3401_p5, %p4284_p1  ;;  %s2777_s21 = sadd.s32 4294967294, %s3830_s20  }
  0x1a   : > { %s349_s30 = sshll.u32 %s4298_s5, 4  ;;  %s3959_s22 = sadd.s32 1, %s3830_s20   ;;  %s350_s30 = int_to_ptr.hbm [resolvable:$true] %s349_s30 }
  0x1b   : > { %3404 = dma.hbm_to_vmem [thread:$0]  (!%p3943_p7), %s322_s23, 5120, %s324_s27, [#allocation9], %s4274_s15, %s4274_s15, %s4276_s16  }
  0x1c   : > { %3410 = dma.hbm_to_vmem [thread:$0]  (!%p3943_p7), %s350_s30, 5120, %s352_s14, [#allocation12], %s4274_s15, %s4274_s15, %s4276_s16  }
  0x1d   : > { %4300 = sst [smem:[#allocation25_spill]] %s3959_s22  ;;  %s40_s26 = sadd.s32 1, %s3826_s19 }
  0x1e   : > { %s37_s28 = ssub.s32 %s3830_s20, %s3959_s22  ;;  %p47_p8 = scmp.ne.s32.totalorder %s3826_s19, %s3822_s18 }
  0x1f   : > { %p38_p9 = scmp.eq.s32.totalorder %s37_s28, 0  ;;  %p48_p10 = scmp.eq.s32.totalorder %s3830_s20, 0 }
  0x20   : > { %p53_p11 = scmp.ne.s32.totalorder %s3822_s18, %s3818_s17  ;;  %p3971_p12 = por %p297_p2, %p47_p8 }
  0x21   : > { %s3976_s27 = scalar_select %p38_p9, %s3826_s19, %s40_s26  }
  0x22   : > { %s4301_s23 = scalar_select %p3971_p12, 1, 0 }
  0x23   : > { %4303 = sst [smem:[#allocation27_spill]] %s3976_s27  ;;  %p49_p13 = por %p48_p10, %p47_p8 }
  0x24   : > { %4302 = sst [smem:[#allocation26_spill]] %s4301_s23  ;;  %p3980_p0 = por %p4284_p1, %p53_p11 }
  0x25   : > { %p303_p3 = scmp.eq.s32.totalorder %s2777_s21, 1  ;;  %p3436_p5 = scmp.lt.s32.totalorder %s3830_s20, 2 }
  0x26   : > { %s3986_s30 = sand.u32 1, %s3826_s19   ;;  %s4285_s13 = sshll.u32 %s3830_s20, 6 }
  0x27   : > { %p3989_p6 = por %p303_p3, %p53_p11  ;;  %s4283_s28 = sshll.u32 %s3986_s30, 6 }
  0x28   : > { %p3994_p2 = pnand %p3436_p5, %p49_p13  ;;  %s424_s15 = sand.u32 1, %s3830_s20  }
  0x29   : > { %s4305_s14 = scalar_select %p3989_p6, 1, 0 }
  0x2a   : > { %s4308_s1 = sld [smem:[#allocation29_spill]]  ;;  %s428_s27 = scalar_lea.vmem [#allocation5], %s4283_s28 }
  0x2b   : > { %4306 = sst [smem:[#allocation28_spill]] %s4305_s14  ;;  %s436_s19 = sshll.u32 %s428_s27, 4  ;;  %s437_s19 = int_to_ptr.vmem [resolvable:$true] %s436_s19 }
  0x2c   : > { %s4006_s22 = scalar_lea.sflag [#allocation6], %s424_s15  ;;  %p3572_p9 = pneg %p3994_p2 }
  0x30   : > { %s433_s3 = scalar_lea.hbm %s4308_s1, %s4285_s13 }
  0x31   : > { %s434_s5 = sshll.u32 %s433_s3, 4  ;;  %s3575_s3 = scalar_lea.hbm %s4308_s1, 128  ;;  %s435_s5 = int_to_ptr.hbm [resolvable:$true] %s434_s5 }
  0x32   : > { %s3568_s14 = sshra.s32 %s435_s5, 4  ;;  %s3569_s14 = int_to_ptr.hbm [resolvable:$true] %s3568_s14 }
  0x33   : > { %s3570_s17 = scalar_lea.hbm %s3569_s14, 64  ;;  %p3576_p13 = scmp.lt.s32.totalorder %s3569_s14, %s4308_s1 }
  0x34   : > { %p3571_p8 = scmp.ne.s32.totalorder %s3569_s14, %s3570_s17  ;;  %p3577_p3 = scmp.lt.s32.totalorder %s3575_s3, %s3570_s17 }
  0x36   : > { %p3573_p10 = pnand %p3572_p9, %p3571_p8  ;;  %p3578_p5 = por %p3577_p3, %p3576_p13 }
  0x38   : > { %p3574_p11 = pneg %p3573_p10 }
  0x3a   : > { %p3579_p1 = pnand %p3578_p5, %p3574_p11 }
  0x3c   : > { %3582 = shalt.err (!%p3579_p1)
}
  0x3d   : > { %s4309_s15 = smov 4   ;;  %s4310_s13 = smov 64  }
  0x3e   : > { %3423 = dma.hbm_to_vmem [thread:$0]  (!%p3994_p2), %s435_s5, 1024, %s437_s19, %s4006_s22, %s4310_s13, %s4310_s13, %s4309_s15  }
  0x3f   : > { %s4311_s4 = sld [smem:[#allocation31_spill]]  ;;  %s3836_s28 = smov [#allocation10]  }
  0x40   : > { %s337_s14 = sshll.u32 %s3836_s28, 4  ;;  %s366_s3 = sshll.u32 %s4269_s7, 4  ;;  %s338_s14 = int_to_ptr.vmem [resolvable:$true] %s337_s14  ;;  %s367_s3 = int_to_ptr.hbm [resolvable:$true] %s366_s3 }
  0x41   : > { %s3837_s27 = smov 16   ;;  %s3838_s1 = smov 1  }
  0x42   : > { %s3839_s5 = smov [#allocation13]   ;;  %s383_s28 = sshll.u32 %s4271_s9, 4  ;;  %s384_s28 = int_to_ptr.hbm [resolvable:$true] %s383_s28 }
  0x43   : > { %s368_s11 = sshll.u32 %s3839_s5, 4  ;;  %s3840_s17 = smov [#allocation14]   ;;  %s369_s11 = int_to_ptr.vmem [resolvable:$true] %s368_s11 }
  0x44   : > { %3413 = dma.hbm_to_vmem [thread:$0]  (!%p3943_p7), %s367_s3, 1024, %s369_s11, [#allocation12], %s4310_s13, %s4310_s13, %s4309_s15  }
  0x45   : > { %s335_s16 = sshll.u32 %s4311_s4, 4  ;;  %s385_s21 = sshll.u32 %s3840_s17, 4  ;;  %s336_s16 = int_to_ptr.hbm [resolvable:$true] %s335_s16  ;;  %s386_s21 = int_to_ptr.vmem [resolvable:$true] %s385_s21 }
  0x46   : > { %3407 = dma.hbm_to_vmem [thread:$0]  (!%p3943_p7), %s336_s16, 80, %s338_s14, [#allocation9], %s3837_s27, %s3837_s27, %s3838_s1  }
  0x47   : > { %s4312_s1 = sshll.u32 %s3830_s20, 6  ;;  %s4313_s19 = sshll.u32 %s3986_s30, 6 }
  0x48   : > { %s411_s27 = scalar_lea.hbm %s4262_s0, %s4312_s1  ;;  %s406_s23 = scalar_lea.vmem [#allocation2], %s4313_s19 }
  0x49   : > { %3416 = dma.hbm_to_vmem [thread:$0]  (!%p3943_p7), %s384_s28, 1024, %s386_s21, [#allocation15], %s4310_s13, %s4310_s13, %s4309_s15  }
  0x4a   : > { %s412_s5 = sshll.u32 %s411_s27, 4  ;;  %s414_s4 = sshll.u32 %s406_s23, 4  ;;  %s413_s5 = int_to_ptr.hbm [resolvable:$true] %s412_s5  ;;  %s415_s4 = int_to_ptr.vmem [resolvable:$true] %s414_s4 }
  0x4b   : > { %s403_s3 = scalar_lea.sflag [#allocation3], %s3986_s30  ;;  %s3688_s11 = sshra.s32 %s413_s5, 4  ;;  %s3689_s11 = int_to_ptr.hbm [resolvable:$true] %s3688_s11 }
  0x4c   : > { %s3690_s17 = scalar_lea.hbm %s3689_s11, 64  ;;  %s3695_s16 = scalar_lea.hbm %s4262_s0, 128 }
  0x4d   : > { %p3691_p1 = scmp.ne.s32.totalorder %s3689_s11, %s3690_s17  ;;  %p3696_p7 = scmp.lt.s32.totalorder %s3689_s11, %s4262_s0 }
  0x4e   : > { %p3697_p11 = scmp.lt.s32.totalorder %s3695_s16, %s3690_s17 }
  0x4f   : > { %p3693_p8 = pnand %p3691_p1, %p3572_p9 }
  0x50   : > { %p3698_p13 = por %p3697_p11, %p3696_p7 }
  0x51   : > { %p3694_p10 = pneg %p3693_p8 }
  0x53   : > { %p3699_p3 = pnand %p3698_p13, %p3694_p10 }
  0x55   : > { %3702 = shalt.err (!%p3699_p3)
}
  0x56   : > { %3420 = dma.hbm_to_vmem [thread:$0]  (!%p3994_p2), %s413_s5, 1024, %s415_s4, %s403_s3, %s4310_s13, %s4310_s13, %s4309_s15  }
  0x57   : > { %s2791_s14 = sshll.u32 %s3986_s30, 2  ;;  %s2792_s27 = sshll.u32 %s3830_s20, 2 }
  0x58   : > { %s454_s12 = scalar_lea.hbm %s4264_s2, %s2792_s27  ;;  %s450_s17 = scalar_lea.vmem [#allocation7], %s2791_s14 }
  0x59   : > { %s456_s11 = sshll.u32 %s454_s12, 4  ;;  %s458_s1 = sshll.u32 %s450_s17, 4  ;;  %s457_s11 = int_to_ptr.hbm [resolvable:$true] %s456_s11  ;;  %s459_s1 = int_to_ptr.vmem [resolvable:$true] %s458_s1 }
  0x5a   : > { %s3718_s16 = sshra.s32 %s457_s11, 4  ;;  %s3725_s13 = scalar_lea.hbm %s4264_s2, 8  ;;  %s3719_s16 = int_to_ptr.hbm [resolvable:$true] %s3718_s16 }
  0x5b   : > { %s3720_s28 = scalar_lea.hbm %s3719_s16, 4  ;;  %p3726_p10 = scmp.lt.s32.totalorder %s3719_s16, %s4264_s2 }
  0x5c   : > { %p3721_p5 = scmp.ne.s32.totalorder %s3719_s16, %s3720_s28  ;;  %p3727_p7 = scmp.lt.s32.totalorder %s3725_s13, %s3720_s28 }
  0x5e   : > { %p3723_p1 = pnand %p3721_p5, %p3572_p9  ;;  %p3728_p11 = por %p3727_p7, %p3726_p10 }
  0x60   : > { %p3724_p8 = pneg %p3723_p1 }
  0x62   : > { %p3729_p13 = pnand %p3728_p11, %p3724_p8 }
  0x64   : > { %3732 = shalt.err (!%p3729_p13)
}
  0x65   : > { %3426 = dma.hbm_to_vmem [thread:$0]  (!%p3994_p2), %s457_s11, 64, %s459_s1, %s4006_s22  }
  0x66   : > { %467 = sbr.rel (%p3931_p4) target bundleno = 3655 (0xe47), region = 64  ;;  %s4088_s3 = sand.u32 (!%p3931_p4), 1, %s3822_s18  }
  0x67   : > { %s2794_s21 = sshll.u32 (!%p3931_p4), %s4088_s3, 6  ;;  %s470_s14 = scalar_lea.sflag (!%p3931_p4), [#allocation3], %s4088_s3 }
  0x68   : > { %s473_s27 = scalar_lea.vmem (!%p3931_p4), [#allocation2], %s2794_s21 }
  0x6b   : > { %3793 = dma.done.wait (%p3980_p0), %s470_s14, 1024  }
  0x6c   : > { %3795 = vsyncadd (%p3980_p0), %s470_s14, 4294966272  ;;  %s479_s22 = sand.u32 1, %s3925_s24   ;;  %s4097_s25 = scalar_lea.vmem [#allocation5], %s2794_s21 }
  0x6d   : > { %s480_s26 = scalar_lea.sflag [#allocation6], %s479_s22 }
  0x6e   : > { %3797 = dma.done.wait (%p3980_p0), %s480_s26, 1088  }
  0x6f   : > { %3799 = vsyncadd (%p3980_p0), %s480_s26, 4294966208  ;;  %s2796_s19 = sshll.u32 %s4088_s3, 2  ;;  %p4314_p4 = scmp.eq.s32.totalorder %s3925_s24, 0 }
  0x70   : > { %s4104_s23 = scalar_lea.vmem [#allocation7], %s2796_s19 }
  0x71   : > { %3801 = dma.done.wait (%p4314_p4), [#allocation9], 5200   ;;  %p4315_p2 = pmov %p4314_p4 }
  0x73   : > { %3803 = vsyncadd (%p4315_p2), [#allocation9], 4294962096  ;;  %p4316_p9 = pmov %p4315_p2 }
  0x74   : > { %p4317_p3 = pmov %p4315_p2 }
  0x75   : > { %3805 = dma.done.wait (%p4316_p9), [#allocation12], 6144  }
  0x76   : > { %3807 = vsyncadd (%p4317_p3), [#allocation12], 4294961152  ;;  %p4318_p5 = pmov %p4315_p2 }
  0x77   : > { %p4319_p0 = pmov %p4315_p2 }
  0x78   : > { %3809 = dma.done.wait (%p4318_p5), [#allocation15], 1024  }
  0x79   : > { %3811 = vsyncadd (%p4319_p0), [#allocation15], 4294966272  ;;  %v3276_v0 = vld [vmem:[%s473_s27 + $0x38] sm:$0xff]  ;;  %v3275_v1 = vld [vmem:[%s473_s27 + $0x30] sm:$0xff]  ;;  %s3256_s22 = sshll.u32 %s3925_s24, 3  ;;  %s4320_s19 = sld [smem:[#allocation33_spill]] }
  0x7a   : > { %698 = vmatpush.bf16.msra.mxu0 %v3276_v0  ;;  %v3274_v2 = vld [vmem:[%s473_s27 + $0x28] sm:$0xff]  ;;  %v3273_v3 = vld [vmem:[%s473_s27 + $0x20] sm:$0xff]  ;;  %v3272_v4 = vld [vmem:[%s473_s27 + $0x18] sm:$0xff]  ;;  %s2601_s16 = scalar_lea.sflag [#allocation4], %s4088_s3 }
  0x7b   : > { %v3271_v5 = vld [vmem:[%s473_s27 + $0x10] sm:$0xff]  ;;  %v3270_v6 = vld [vmem:[%s473_s27 + $0x8] sm:$0xff]  ;;  %v3269_v7 = vld [vmem:[%s473_s27] sm:$0xff]  ;;  %s2802_s27 = sshll.u32 %s4088_s3, 3 }
  0x7c   : > { %v4119_v8 = vld [vmem:[%s4097_s25] sm:$0xff]  ;;  %v4123_v9 = vld [vmem:[%s4097_s25 + $0x8] sm:$0xff]  ;;  %v4127_v10 = vld [vmem:[%s4097_s25 + $0x10] sm:$0xff]  ;;  %s567_s11 = scalar_lea.vmem [#allocation16], %s2802_s27 }
  0x7d   : > { %v4131_v11 = vld [vmem:[%s4097_s25 + $0x18] sm:$0xff]  ;;  %v4135_v12 = vld [vmem:[%s4097_s25 + $0x20] sm:$0xff]  ;;  %v4139_v15 = vld [vmem:[%s4097_s25 + $0x28] sm:$0xff]  ;;  %s2613_s17 = sshll.u32 %s567_s11, 4  ;;  %s2614_s17 = int_to_ptr.vmem [resolvable:$true] %s2613_s17 }
  0x7e   : > { %699 = vmatpush.bf16.msra.mxu0 %v3275_v1  ;;  %v3284_v13 = vld [vmem:[#allocation8 + $0x38] sm:$0xff]  ;;  %v3283_v14 = vld [vmem:[#allocation8 + $0x30] sm:$0xff]  ;;  %v3282_v16 = vld [vmem:[#allocation8 + $0x28] sm:$0xff] }
  0x7f   : > { %823 = vmatpush.bf16.msra.mxu1 %v3284_v13  ;;  %v3281_v17 = vld [vmem:[#allocation8 + $0x20] sm:$0xff]  ;;  %v3280_v18 = vld [vmem:[#allocation8 + $0x18] sm:$0xff]  ;;  %v3279_v19 = vld [vmem:[#allocation8 + $0x10] sm:$0xff]  ;;  %s2611_s29 = scalar_lea.hbm %s4320_s19, %s3256_s22 }
  0x80   : > { %v4143_v20 = vld [vmem:[%s4097_s25 + $0x30] sm:$0xff]  ;;  %v3277_v22 = vld [vmem:[#allocation8] sm:$0xff]  ;;  %v4147_v23 = vld [vmem:[%s4097_s25 + $0x38] sm:$0xff]  ;;  %s2615_s1 = sshll.u32 %s2611_s29, 4  ;;  %s2616_s1 = int_to_ptr.hbm [resolvable:$true] %s2615_s1 }
  0x81   : > { %v3278_v21 = vld [vmem:[#allocation8 + $0x8] sm:$0xff]  ;;  %v3292_v40 = vld [vmem:[#allocation11 + $0x38] sm:$0xff]  ;;  %v3291_v43 = vld [vmem:[#allocation11 + $0x30] sm:$0xff]  ;;  %s3762_s28 = sshra.s32 %s2616_s1, 4  ;;  %s3763_s28 = int_to_ptr.hbm [resolvable:$true] %s3762_s28 }
  0x82   : > { %700 = vmatpush.bf16.msra.mxu0 %v3274_v2  ;;  %964 = vmatpush.bf16.msra.mxu2 %v3292_v40  ;;  %v3290_v44 = vld [vmem:[#allocation11 + $0x28] sm:$0xff]  ;;  %v3289_v46 = vld [vmem:[#allocation11 + $0x20] sm:$0xff]  ;;  %v3288_v47 = vld [vmem:[#allocation11 + $0x18] sm:$0xff]  ;;  %s3764_s4 = scalar_lea.hbm %s3763_s28, 8 }
  0x83   : > { %824 = vmatpush.bf16.msra.mxu1 %v3283_v14  ;;  %v3287_v50 = vld [vmem:[#allocation11 + $0x10] sm:$0xff]  ;;  %v3286_v51 = vld [vmem:[#allocation11 + $0x8] sm:$0xff]  ;;  %v3285_v53 = vld [vmem:[#allocation11] sm:$0xff]  ;;  %p3765_p1 = scmp.ne.s32.totalorder %s3763_s28, %s3764_s4 }
  0x84   : > { %v3484_v57 = vld [vmem:[#allocation10] ss:$0 sm:$0xff] }
  0x85   : > { %p3766_p8 = pnand %p3765_p1, %p3971_p12 }
  0x86   : > { %701 = vmatpush.bf16.msra.mxu0 %v3273_v3  ;;  %965 = vmatpush.bf16.msra.mxu2 %v3291_v43 }
  0x87   : > { %825 = vmatpush.bf16.msra.mxu1 %v3282_v16  ;;  %p3767_p10 = pneg %p3766_p8 }
  0x8a   : > { %702 = vmatpush.bf16.msra.mxu0 %v3272_v4  ;;  %966 = vmatpush.bf16.msra.mxu2 %v3290_v44 }
  0x8b   : > { %826 = vmatpush.bf16.msra.mxu1 %v3281_v17 }
  0x8e   : > { %703 = vmatpush.bf16.msra.mxu0 %v3271_v5  ;;  %967 = vmatpush.bf16.msra.mxu2 %v3289_v46 }
  0x8f   : > { %827 = vmatpush.bf16.msra.mxu1 %v3280_v18 }
  0x92   : > { %704 = vmatpush.bf16.msra.mxu0 %v3270_v6  ;;  %968 = vmatpush.bf16.msra.mxu2 %v3288_v47 }
  0x93   : > { %828 = vmatpush.bf16.msra.mxu1 %v3279_v19 }
  0x96   : > { %705 = vmatpush.bf16.msra.mxu0 %v3269_v7  ;;  %969 = vmatpush.bf16.msra.mxu2 %v3287_v50 }
  0x97   : > { %829 = vmatpush.bf16.msra.mxu1 %v3278_v21 }
  0x99   : > { %706 = vmatmul.bf16.vlgmr.msra.gmra.mxu0 %v4119_v8 }
  0x9a   : > { %970 = vmatpush.bf16.msra.mxu2 %v3286_v51 }
  0x9b   : > { %830 = vmatpush.bf16.msra.mxu1 %v3277_v22 }
  0x9e   : > { %971 = vmatpush.bf16.msra.mxu2 %v3285_v53 }
  0xa9   : > { %711 = vmatmul.bf16.gmra.mxu0 %v4123_v9 }
  0xb9   : > { %716 = vmatmul.bf16.gmra.mxu0 %v4127_v10 }
  0xc9   : > { %721 = vmatmul.bf16.gmra.mxu0 %v4131_v11 }
  0xd9   : > { %726 = vmatmul.bf16.gmra.mxu0 %v4135_v12 }
  0xe9   : > { %731 = vmatmul.bf16.gmra.mxu0 %v4139_v15 }
  0xf9   : > { %736 = vmatmul.bf16.gmra.mxu0 %v4143_v20 }
 0x109   : > { %741 = vmatmul.bf16.gmra.mxu0 %v4147_v23 }
 0x116   : > { %v707_v24 = vpop.f32.mrf.mxu0 }
 0x11e   : > { %v709_v25 = vpop.f32.mrf.mxu0 }
 0x11f   : > { %v747_v26 = vpack.c.bf16 %v709_v25, %v707_v24 }
 0x121   : > { %831 = vmatmul.bf16.vlgmr.msra.gmra.mxu1 %v747_v26 }
 0x126   : > { %v712_v27 = vpop.f32.mrf.mxu0 }
 0x12e   : > { %v714_v28 = vpop.f32.mrf.mxu0 }
 0x12f   : > { %v748_v29 = vpack.c.bf16 %v714_v28, %v712_v27 }
 0x131   : > { %836 = vmatmul.bf16.gmra.mxu1 %v748_v29 }
 0x136   : > { %v717_v30 = vpop.f32.mrf.mxu0 }
 0x13e   : > { %v719_v31 = vpop.f32.mrf.mxu0 }
 0x13f   : > { %v749_v32 = vpack.c.bf16 %v719_v31, %v717_v30 }
 0x141   : > { %841 = vmatmul.bf16.gmra.mxu1 %v749_v32 }
 0x146   : > { %v722_v33 = vpop.f32.mrf.mxu0 }
 0x14e   : > { %v724_v34 = vpop.f32.mrf.mxu0 }
 0x14f   : > { %v750_v35 = vpack.c.bf16 %v724_v34, %v722_v33 }
 0x151   : > { %846 = vmatmul.bf16.gmra.mxu1 %v750_v35 }
 0x156   : > { %v727_v36 = vpop.f32.mrf.mxu0 }
 0x15e   : > { %v729_v37 = vpop.f32.mrf.mxu0 }
 0x15f   : > { %v751_v38 = vpack.c.bf16 %v729_v37, %v727_v36 }
 0x161   : > { %851 = vmatmul.bf16.gmra.mxu1 %v751_v38 }
 0x166   : > { %v732_v39 = vpop.f32.mrf.mxu0 }
 0x16e   : > { %v734_v41 = vpop.f32.mrf.mxu0 }
 0x16f   : > { %v752_v42 = vpack.c.bf16 %v734_v41, %v732_v39 }
 0x171   : > { %856 = vmatmul.bf16.gmra.mxu1 %v752_v42 }
 0x176   : > { %v737_v45 = vpop.f32.mrf.mxu0 }
 0x17e   : > { %v739_v48 = vpop.f32.mrf.mxu0 }
 0x17f   : > { %v753_v49 = vpack.c.bf16 %v739_v48, %v737_v45 }
 0x181   : > { %861 = vmatmul.bf16.gmra.mxu1 %v753_v49 }
 0x186   : > { %v742_v52 = vpop.f32.mrf.mxu0 }
 0x18e   : > { %v744_v54 = vpop.f32.mrf.mxu0 }
 0x18f   : > { %v754_v55 = vpack.c.bf16 %v744_v54, %v742_v52 }
 0x191   : > { %866 = vmatmul.bf16.gmra.mxu1 %v754_v55 }
 0x19e   : > { %v832_v56 = vpop.f32.mrf.mxu1 }
 0x19f   : > { %v833_v58 = vadd.f32 %v3484_v57, %v832_v56 }
 0x1a1   : > { %v872_v61 = vmax.f32 %v833_v58, 0.0 }
 0x1a6   : > { %v834_v59 = vpop.f32.mrf.mxu1 }
 0x1a7   : > { %v835_v60 = vadd.f32 %v3484_v57, %v834_v59 }
 0x1a9   : > { %v873_v62 = vmax.f32 %v835_v60, 0.0 }
 0x1ab   : > { %v888_v63 = vpack.c.bf16 %v873_v62, %v872_v61 }
 0x1ad   : > { %972 = vmatmul.bf16.vlgmr.msra.gmra.mxu2 %v888_v63 }
 0x1ae   : > { %v837_v0 = vpop.f32.mrf.mxu1 }
 0x1af   : > { %v838_v1 = vadd.f32 %v3484_v57, %v837_v0 }
 0x1b1   : > { %v874_v4 = vmax.f32 %v838_v1, 0.0 }
 0x1b6   : > { %v839_v2 = vpop.f32.mrf.mxu1 }
 0x1b7   : > { %v840_v3 = vadd.f32 %v3484_v57, %v839_v2 }
 0x1b9   : > { %v875_v5 = vmax.f32 %v840_v3, 0.0 }
 0x1bb   : > { %v889_v6 = vpack.c.bf16 %v875_v5, %v874_v4 }
 0x1bd   : > { %977 = vmatmul.bf16.gmra.mxu2 %v889_v6 }
 0x1be   : > { %v842_v7 = vpop.f32.mrf.mxu1 }
 0x1bf   : > { %v843_v13 = vadd.f32 %v3484_v57, %v842_v7 }
 0x1c1   : > { %v876_v17 = vmax.f32 %v843_v13, 0.0 }
 0x1c6   : > { %v844_v14 = vpop.f32.mrf.mxu1 }
 0x1c7   : > { %v845_v16 = vadd.f32 %v3484_v57, %v844_v14 }
 0x1c9   : > { %v877_v18 = vmax.f32 %v845_v16, 0.0 }
 0x1cb   : > { %v890_v19 = vpack.c.bf16 %v877_v18, %v876_v17 }
 0x1cd   : > { %982 = vmatmul.bf16.gmra.mxu2 %v890_v19 }
 0x1ce   : > { %v847_v21 = vpop.f32.mrf.mxu1 }
 0x1cf   : > { %v848_v22 = vadd.f32 %v3484_v57, %v847_v21 }
 0x1d1   : > { %v878_v26 = vmax.f32 %v848_v22, 0.0 }
 0x1d6   : > { %v849_v24 = vpop.f32.mrf.mxu1 }
 0x1d7   : > { %v850_v25 = vadd.f32 %v3484_v57, %v849_v24 }
 0x1d9   : > { %v879_v27 = vmax.f32 %v850_v25, 0.0 }
 0x1db   : > { %v891_v28 = vpack.c.bf16 %v879_v27, %v878_v26 }
 0x1dd   : > { %987 = vmatmul.bf16.gmra.mxu2 %v891_v28 }
 0x1de   : > { %v852_v29 = vpop.f32.mrf.mxu1 }
 0x1df   : > { %v853_v30 = vadd.f32 %v3484_v57, %v852_v29 }
 0x1e1   : > { %v880_v33 = vmax.f32 %v853_v30, 0.0 }
 0x1e6   : > { %v854_v31 = vpop.f32.mrf.mxu1 }
 0x1e7   : > { %v855_v32 = vadd.f32 %v3484_v57, %v854_v31 }
 0x1e9   : > { %v881_v34 = vmax.f32 %v855_v32, 0.0 }
 0x1eb   : > { %v892_v35 = vpack.c.bf16 %v881_v34, %v880_v33 }
 0x1ed   : > { %992 = vmatmul.bf16.gmra.mxu2 %v892_v35 }
 0x1ee   : > { %v857_v36 = vpop.f32.mrf.mxu1 }
 0x1ef   : > { %v858_v37 = vadd.f32 %v3484_v57, %v857_v36 }
 0x1f1   : > { %v882_v40 = vmax.f32 %v858_v37, 0.0 }
 0x1f6   : > { %v859_v38 = vpop.f32.mrf.mxu1 }
 0x1f7   : > { %v860_v39 = vadd.f32 %v3484_v57, %v859_v38 }
 0x1f9   : > { %v883_v41 = vmax.f32 %v860_v39, 0.0 }
 0x1fb   : > { %v893_v42 = vpack.c.bf16 %v883_v41, %v882_v40 }
 0x1fd   : > { %997 = vmatmul.bf16.gmra.mxu2 %v893_v42 }
 0x1fe   : > { %v862_v43 = vpop.f32.mrf.mxu1 }
 0x1ff   : > { %v863_v44 = vadd.f32 %v3484_v57, %v862_v43 }
 0x201   : > { %v884_v47 = vmax.f32 %v863_v44, 0.0 }
 0x206   : > { %v864_v45 = vpop.f32.mrf.mxu1 }
 0x207   : > { %v865_v46 = vadd.f32 %v3484_v57, %v864_v45 }
 0x209   : > { %v885_v48 = vmax.f32 %v865_v46, 0.0 }
 0x20b   : > { %v894_v49 = vpack.c.bf16 %v885_v48, %v884_v47 }
 0x20d   : > { %1002 = vmatmul.bf16.gmra.mxu2 %v894_v49 }
 0x20e   : > { %v867_v50 = vpop.f32.mrf.mxu1 }
 0x20f   : > { %v868_v51 = vadd.f32 %v3484_v57, %v867_v50 }
 0x211   : > { %v886_v54 = vmax.f32 %v868_v51, 0.0 }
 0x216   : > { %v869_v52 = vpop.f32.mrf.mxu1 }
 0x217   : > { %v870_v53 = vadd.f32 %v3484_v57, %v869_v52  ;;  %v3485_v57 = vld [vmem:[%s4268_s6] ss:$0 sm:$0xff] }
 0x219   : > { %v887_v55 = vmax.f32 %v870_v53, 0.0 }
 0x21b   : > { %v895_v56 = vpack.c.bf16 %v887_v55, %v886_v54 }
 0x21d   : > { %1007 = vmatmul.bf16.gmra.mxu2 %v895_v56 }
 0x230   : > { %v973_v58 = vpop.f32.mrf.mxu2 }
 0x231   : > { %v974_v52 = vadd.f32 %v3485_v57, %v973_v58  ;;  %v3299_v58 = vld [vmem:[#allocation8 + $0x70] sm:$0xff] }
 0x233   : > { %v1013_v56 = vmax.f32 %v974_v52, 0.0 }
 0x238   : > { %v975_v59 = vpop.f32.mrf.mxu2 }
 0x239   : > { %v976_v49 = vadd.f32 %v3485_v57, %v975_v59  ;;  %v3300_v59 = vld [vmem:[#allocation8 + $0x78] sm:$0xff] }
 0x23a   : > { %1164 = vmatpush.bf16.msrb.mxu0 %v3300_v59 }
 0x23b   : > { %v1014_v54 = vmax.f32 %v976_v49, 0.0 }
 0x23e   : > { %1165 = vmatpush.bf16.msrb.mxu0 %v3299_v58 }
 0x240   : > { %v978_v60 = vpop.f32.mrf.mxu2 }
 0x241   : > { %v979_v47 = vadd.f32 %v3485_v57, %v978_v60  ;;  %v3298_v60 = vld [vmem:[#allocation8 + $0x68] sm:$0xff] }
 0x242   : > { %1166 = vmatpush.bf16.msrb.mxu0 %v3298_v60 }
 0x243   : > { %v1015_v53 = vmax.f32 %v979_v47, 0.0 }
 0x248   : > { %v980_v61 = vpop.f32.mrf.mxu2 }
 0x249   : > { %v981_v44 = vadd.f32 %v3485_v57, %v980_v61  ;;  %v3297_v61 = vld [vmem:[#allocation8 + $0x60] sm:$0xff] }
 0x24a   : > { %1167 = vmatpush.bf16.msrb.mxu0 %v3297_v61 }
 0x24b   : > { %v1016_v50 = vmax.f32 %v981_v44, 0.0 }
 0x24d   : > { %v1030_v55 = vpack.c.bf16 %v1016_v50, %v1015_v53 }
 0x250   : > { %v983_v62 = vpop.f32.mrf.mxu2 }
 0x251   : > { %v984_v42 = vadd.f32 %v3485_v57, %v983_v62  ;;  %v3296_v62 = vld [vmem:[#allocation8 + $0x58] sm:$0xff] }
 0x252   : > { %1168 = vmatpush.bf16.msrb.mxu0 %v3296_v62 }
 0x253   : > { %v1017_v48 = vmax.f32 %v984_v42, 0.0 }
 0x258   : > { %v985_v63 = vpop.f32.mrf.mxu2 }
 0x259   : > { %v986_v39 = vadd.f32 %v3485_v57, %v985_v63  ;;  %v1029_v63 = vpack.c.bf16 %v1014_v54, %v1013_v56 }
 0x25b   : > { %v1018_v45 = vmax.f32 %v986_v39, 0.0  ;;  %v3301_v39 = vld [vmem:[#allocation11 + $0x40] sm:$0xff] }
 0x25d   : > { %v1031_v51 = vpack.c.bf16 %v1018_v45, %v1017_v48 }
 0x260   : > { %v988_v0 = vpop.f32.mrf.mxu2 }
 0x261   : > { %v989_v37 = vadd.f32 %v3485_v57, %v988_v0  ;;  %v3295_v0 = vld [vmem:[#allocation8 + $0x50] sm:$0xff] }
 0x262   : > { %1169 = vmatpush.bf16.msrb.mxu0 %v3295_v0 }
 0x263   : > { %v1019_v43 = vmax.f32 %v989_v37, 0.0  ;;  %v3302_v37 = vld [vmem:[#allocation11 + $0x48] sm:$0xff] }
 0x268   : > { %v990_v1 = vpop.f32.mrf.mxu2 }
 0x269   : > { %v991_v34 = vadd.f32 %v3485_v57, %v990_v1  ;;  %v3294_v1 = vld [vmem:[#allocation8 + $0x48] sm:$0xff] }
 0x26a   : > { %1170 = vmatpush.bf16.msrb.mxu0 %v3294_v1 }
 0x26b   : > { %v1020_v40 = vmax.f32 %v991_v34, 0.0 }
 0x26d   : > { %v1032_v46 = vpack.c.bf16 %v1020_v40, %v1019_v43  ;;  %v3486_v43 = vld [vmem:[#allocation10 + $0x1] ss:$0 sm:$0xff] }
 0x270   : > { %v993_v2 = vpop.f32.mrf.mxu2 }
 0x271   : > { %v994_v32 = vadd.f32 %v3485_v57, %v993_v2  ;;  %v3293_v2 = vld [vmem:[#allocation8 + $0x40] sm:$0xff] }
 0x272   : > { %1171 = vmatpush.bf16.msrb.mxu0 %v3293_v2 }
 0x273   : > { %v1021_v38 = vmax.f32 %v994_v32, 0.0  ;;  %v3305_v32 = vld [vmem:[#allocation11 + $0x60] sm:$0xff] }
 0x278   : > { %v995_v3 = vpop.f32.mrf.mxu2 }
 0x279   : > { %v996_v29 = vadd.f32 %v3485_v57, %v995_v3 }
 0x27b   : > { %v1022_v35 = vmax.f32 %v996_v29, 0.0  ;;  %v3307_v29 = vld [vmem:[#allocation11 + $0x70] sm:$0xff] }
 0x27d   : > { %v1033_v41 = vpack.c.bf16 %v1022_v35, %v1021_v38 }
 0x280   : > { %v998_v4 = vpop.f32.mrf.mxu2 }
 0x281   : > { %v999_v27 = vadd.f32 %v3485_v57, %v998_v4 }
 0x283   : > { %v1023_v33 = vmax.f32 %v999_v27, 0.0 }
 0x288   : > { %v1000_v5 = vpop.f32.mrf.mxu2 }
 0x289   : > { %v1001_v24 = vadd.f32 %v3485_v57, %v1000_v5 }
 0x28b   : > { %v1024_v30 = vmax.f32 %v1001_v24, 0.0 }
 0x28d   : > { %v1034_v36 = vpack.c.bf16 %v1024_v30, %v1023_v33  ;;  %v3306_v30 = vld [vmem:[#allocation11 + $0x68] sm:$0xff]  ;;  %v3304_v33 = vld [vmem:[#allocation11 + $0x58] sm:$0xff] }
 0x290   : > { %v1003_v6 = vpop.f32.mrf.mxu2 }
 0x291   : > { %v1004_v19 = vadd.f32 %v3485_v57, %v1003_v6 }
 0x293   : > { %v1025_v28 = vmax.f32 %v1004_v19, 0.0 }
 0x298   : > { %v1005_v7 = vpop.f32.mrf.mxu2 }
 0x299   : > { %v1006_v17 = vadd.f32 %v3485_v57, %v1005_v7 }
 0x29b   : > { %v1026_v25 = vmax.f32 %v1006_v17, 0.0 }
 0x29d   : > { %v1035_v31 = vpack.c.bf16 %v1026_v25, %v1025_v28 }
 0x2a0   : > { %v1008_v13 = vpop.f32.mrf.mxu2 }
 0x2a1   : > { %v1009_v14 = vadd.f32 %v3485_v57, %v1008_v13 }
 0x2a3   : > { %v1027_v21 = vmax.f32 %v1009_v14, 0.0 }
 0x2a8   : > { %v1010_v16 = vpop.f32.mrf.mxu2 }
 0x2a9   : > { %v1011_v18 = vadd.f32 %v3485_v57, %v1010_v16 }
 0x2ab   : > { %v1028_v22 = vmax.f32 %v1011_v18, 0.0 }
 0x2ad   : > { %v1036_v26 = vpack.c.bf16 %v1028_v22, %v1027_v21 }
 0x2af   : > { %1037 = vmatpush.bf16.msra.mxu3 %v1036_v26  ;;  %v3308_v26 = vld [vmem:[#allocation11 + $0x78] sm:$0xff] }
 0x2b0   : > { %1307 = vmatpush.bf16.msrb.mxu1 %v3308_v26 }
 0x2b3   : > { %1038 = vmatpush.bf16.msra.mxu3 %v1035_v31 }
 0x2b4   : > { %1308 = vmatpush.bf16.msrb.mxu1 %v3307_v29 }
 0x2b7   : > { %1039 = vmatpush.bf16.msra.mxu3 %v1034_v36  ;;  %v3303_v36 = vld [vmem:[#allocation11 + $0x50] sm:$0xff] }
 0x2b8   : > { %1309 = vmatpush.bf16.msrb.mxu1 %v3306_v30 }
 0x2bb   : > { %1040 = vmatpush.bf16.msra.mxu3 %v1033_v41 }
 0x2bc   : > { %1310 = vmatpush.bf16.msrb.mxu1 %v3305_v32 }
 0x2bf   : > { %1041 = vmatpush.bf16.msra.mxu3 %v1032_v46 }
 0x2c0   : > { %1311 = vmatpush.bf16.msrb.mxu1 %v3304_v33 }
 0x2c3   : > { %1042 = vmatpush.bf16.msra.mxu3 %v1031_v51 }
 0x2c4   : > { %1312 = vmatpush.bf16.msrb.mxu1 %v3303_v36 }
 0x2c7   : > { %1043 = vmatpush.bf16.msra.mxu3 %v1030_v55 }
 0x2c8   : > { %1313 = vmatpush.bf16.msrb.mxu1 %v3302_v37 }
 0x2cb   : > { %1044 = vmatpush.bf16.msra.mxu3 %v1029_v63 }
 0x2cc   : > { %1314 = vmatpush.bf16.msrb.mxu1 %v3301_v39 }
 0x2ce   : > { %1045 = vmatmul.bf16.vlgmr.msra.gmra.mxu3 %v4119_v8 }
 0x2de   : > { %1050 = vmatmul.bf16.gmra.mxu3 %v4123_v9 }
 0x2ee   : > { %1055 = vmatmul.bf16.gmra.mxu3 %v4127_v10 }
 0x2fe   : > { %1060 = vmatmul.bf16.gmra.mxu3 %v4131_v11 }
 0x30e   : > { %1065 = vmatmul.bf16.gmra.mxu3 %v4135_v12 }
 0x31e   : > { %1070 = vmatmul.bf16.gmra.mxu3 %v4139_v15 }
 0x32e   : > { %1075 = vmatmul.bf16.gmra.mxu3 %v4143_v20 }
 0x33e   : > { %1080 = vmatmul.bf16.gmra.mxu3 %v4147_v23 }
 0x351   : > { %v1046_v3 = vpop.f32.mrf.mxu3 }
 0x359   : > { %v1048_v4 = vpop.f32.mrf.mxu3 }
 0x35a   : > { %v1086_v5 = vpack.c.bf16 %v1048_v4, %v1046_v3 }
 0x35c   : > { %1172 = vmatmul.bf16.vlgmr.msrb.gmra.mxu0 %v1086_v5 }
 0x361   : > { %v1051_v6 = vpop.f32.mrf.mxu3 }
 0x369   : > { %v1053_v7 = vpop.f32.mrf.mxu3 }
 0x36a   : > { %v1087_v13 = vpack.c.bf16 %v1053_v7, %v1051_v6 }
 0x36c   : > { %1177 = vmatmul.bf16.gmra.mxu0 %v1087_v13 }
 0x371   : > { %v1056_v57 = vpop.f32.mrf.mxu3 }
 0x379   : > { %v1058_v14 = vpop.f32.mrf.mxu3 }
 0x37a   : > { %v1088_v16 = vpack.c.bf16 %v1058_v14, %v1056_v57 }
 0x37c   : > { %1182 = vmatmul.bf16.gmra.mxu0 %v1088_v16 }
 0x381   : > { %v1061_v17 = vpop.f32.mrf.mxu3 }
 0x389   : > { %v1063_v18 = vpop.f32.mrf.mxu3 }
 0x38a   : > { %v1089_v19 = vpack.c.bf16 %v1063_v18, %v1061_v17 }
 0x38c   : > { %1187 = vmatmul.bf16.gmra.mxu0 %v1089_v19 }
 0x391   : > { %v1066_v21 = vpop.f32.mrf.mxu3 }
 0x399   : > { %v1068_v22 = vpop.f32.mrf.mxu3 }
 0x39a   : > { %v1090_v24 = vpack.c.bf16 %v1068_v22, %v1066_v21 }
 0x39c   : > { %1192 = vmatmul.bf16.gmra.mxu0 %v1090_v24 }
 0x3a1   : > { %v1071_v25 = vpop.f32.mrf.mxu3 }
 0x3a9   : > { %v1073_v27 = vpop.f32.mrf.mxu3 }
 0x3aa   : > { %v1091_v28 = vpack.c.bf16 %v1073_v27, %v1071_v25 }
 0x3ac   : > { %1197 = vmatmul.bf16.gmra.mxu0 %v1091_v28 }
 0x3b1   : > { %v1076_v31 = vpop.f32.mrf.mxu3 }
 0x3b9   : > { %v1078_v34 = vpop.f32.mrf.mxu3 }
 0x3ba   : > { %v1092_v35 = vpack.c.bf16 %v1078_v34, %v1076_v31 }
 0x3bc   : > { %1202 = vmatmul.bf16.gmra.mxu0 %v1092_v35 }
 0x3c1   : > { %v1081_v38 = vpop.f32.mrf.mxu3 }
 0x3c9   : > { %v1083_v40 = vpop.f32.mrf.mxu3 }
 0x3ca   : > { %v1093_v41 = vpack.c.bf16 %v1083_v40, %v1081_v38 }
 0x3cc   : > { %1207 = vmatmul.bf16.gmra.mxu0 %v1093_v41 }
 0x3d9   : > { %v1173_v42 = vpop.f32.mrf.mxu0 }
 0x3da   : > { %v1174_v44 = vadd.f32 %v3486_v43, %v1173_v42 }
 0x3dc   : > { %v1213_v47 = vmax.f32 %v1174_v44, 0.0 }
 0x3e1   : > { %v1175_v45 = vpop.f32.mrf.mxu0 }
 0x3e2   : > { %v1176_v46 = vadd.f32 %v3486_v43, %v1175_v45 }
 0x3e4   : > { %v1214_v48 = vmax.f32 %v1176_v46, 0.0 }
 0x3e6   : > { %v1229_v49 = vpack.c.bf16 %v1214_v48, %v1213_v47 }
 0x3e8   : > { %1315 = vmatmul.bf16.vlgmr.msrb.gmra.mxu1 %v1229_v49 }
 0x3e9   : > { %v1178_v50 = vpop.f32.mrf.mxu0 }
 0x3ea   : > { %v1179_v51 = vadd.f32 %v3486_v43, %v1178_v50 }
 0x3ec   : > { %v1215_v54 = vmax.f32 %v1179_v51, 0.0 }
 0x3f1   : > { %v1180_v52 = vpop.f32.mrf.mxu0 }
 0x3f2   : > { %v1181_v53 = vadd.f32 %v3486_v43, %v1180_v52 }
 0x3f4   : > { %v1216_v55 = vmax.f32 %v1181_v53, 0.0 }
 0x3f6   : > { %v1230_v56 = vpack.c.bf16 %v1216_v55, %v1215_v54 }
 0x3f8   : > { %1320 = vmatmul.bf16.gmra.mxu1 %v1230_v56 }
 0x3f9   : > { %v1183_v63 = vpop.f32.mrf.mxu0 }
 0x3fa   : > { %v1184_v59 = vadd.f32 %v3486_v43, %v1183_v63 }
 0x3fc   : > { %v1217_v61 = vmax.f32 %v1184_v59, 0.0 }
 0x401   : > { %v1185_v58 = vpop.f32.mrf.mxu0 }
 0x402   : > { %v1186_v60 = vadd.f32 %v3486_v43, %v1185_v58 }
 0x404   : > { %v1218_v62 = vmax.f32 %v1186_v60, 0.0 }
 0x406   : > { %v1231_v0 = vpack.c.bf16 %v1218_v62, %v1217_v61 }
 0x408   : > { %1325 = vmatmul.bf16.gmra.mxu1 %v1231_v0 }
 0x409   : > { %v1188_v1 = vpop.f32.mrf.mxu0 }
 0x40a   : > { %v1189_v2 = vadd.f32 %v3486_v43, %v1188_v1 }
 0x40c   : > { %v1219_v5 = vmax.f32 %v1189_v2, 0.0 }
 0x411   : > { %v1190_v3 = vpop.f32.mrf.mxu0 }
 0x412   : > { %v1191_v4 = vadd.f32 %v3486_v43, %v1190_v3 }
 0x414   : > { %v1220_v6 = vmax.f32 %v1191_v4, 0.0 }
 0x416   : > { %v1232_v7 = vpack.c.bf16 %v1220_v6, %v1219_v5 }
 0x418   : > { %1330 = vmatmul.bf16.gmra.mxu1 %v1232_v7 }
 0x419   : > { %v1193_v13 = vpop.f32.mrf.mxu0 }
 0x41a   : > { %v1194_v57 = vadd.f32 %v3486_v43, %v1193_v13 }
 0x41c   : > { %v1221_v17 = vmax.f32 %v1194_v57, 0.0 }
 0x421   : > { %v1195_v14 = vpop.f32.mrf.mxu0 }
 0x422   : > { %v1196_v16 = vadd.f32 %v3486_v43, %v1195_v14 }
 0x424   : > { %v1222_v18 = vmax.f32 %v1196_v16, 0.0 }
 0x426   : > { %v1233_v19 = vpack.c.bf16 %v1222_v18, %v1221_v17 }
 0x428   : > { %1335 = vmatmul.bf16.gmra.mxu1 %v1233_v19 }
 0x429   : > { %v1198_v21 = vpop.f32.mrf.mxu0 }
 0x42a   : > { %v1199_v22 = vadd.f32 %v3486_v43, %v1198_v21 }
 0x42c   : > { %v1223_v26 = vmax.f32 %v1199_v22, 0.0 }
 0x431   : > { %v1200_v24 = vpop.f32.mrf.mxu0 }
 0x432   : > { %v1201_v25 = vadd.f32 %v3486_v43, %v1200_v24 }
 0x434   : > { %v1224_v27 = vmax.f32 %v1201_v25, 0.0 }
 0x436   : > { %v1234_v28 = vpack.c.bf16 %v1224_v27, %v1223_v26 }
 0x438   : > { %1340 = vmatmul.bf16.gmra.mxu1 %v1234_v28 }
 0x439   : > { %v1203_v29 = vpop.f32.mrf.mxu0 }
 0x43a   : > { %v1204_v30 = vadd.f32 %v3486_v43, %v1203_v29 }
 0x43c   : > { %v1225_v33 = vmax.f32 %v1204_v30, 0.0 }
 0x441   : > { %v1205_v31 = vpop.f32.mrf.mxu0 }
 0x442   : > { %v1206_v32 = vadd.f32 %v3486_v43, %v1205_v31 }
 0x444   : > { %v1226_v34 = vmax.f32 %v1206_v32, 0.0 }
 0x446   : > { %v1235_v35 = vpack.c.bf16 %v1226_v34, %v1225_v33 }
 0x448   : > { %1345 = vmatmul.bf16.gmra.mxu1 %v1235_v35 }
 0x449   : > { %v1208_v36 = vpop.f32.mrf.mxu0 }
 0x44a   : > { %v1209_v37 = vadd.f32 %v3486_v43, %v1208_v36 }
 0x44c   : > { %v1227_v40 = vmax.f32 %v1209_v37, 0.0 }
 0x451   : > { %v1210_v38 = vpop.f32.mrf.mxu0 }
 0x452   : > { %v1211_v39 = vadd.f32 %v3486_v43, %v1210_v38  ;;  %v3487_v43 = vld [vmem:[%s4268_s6 + $0x1] ss:$0 sm:$0xff] }
 0x454   : > { %v1228_v41 = vmax.f32 %v1211_v39, 0.0 }
 0x456   : > { %v1236_v42 = vpack.c.bf16 %v1228_v41, %v1227_v40 }
 0x458   : > { %1350 = vmatmul.bf16.gmra.mxu1 %v1236_v42 }
 0x465   : > { %v1316_v44 = vpop.f32.mrf.mxu1 }
 0x466   : > { %v1317_v38 = vadd.f32 %v3487_v43, %v1316_v44  ;;  %v3315_v44 = vld [vmem:[#allocation8 + $0xb0] sm:$0xff] }
 0x468   : > { %v1356_v42 = vmax.f32 %v1317_v38, 0.0 }
 0x46d   : > { %v1318_v45 = vpop.f32.mrf.mxu1 }
 0x46e   : > { %v1319_v35 = vadd.f32 %v3487_v43, %v1318_v45  ;;  %v3316_v45 = vld [vmem:[#allocation8 + $0xb8] sm:$0xff] }
 0x46f   : > { %1507 = vmatpush.bf16.msrb.mxu3 %v3316_v45 }
 0x470   : > { %v1357_v40 = vmax.f32 %v1319_v35, 0.0 }
 0x473   : > { %1508 = vmatpush.bf16.msrb.mxu3 %v3315_v44 }
 0x475   : > { %v1321_v46 = vpop.f32.mrf.mxu1 }
 0x476   : > { %v1322_v33 = vadd.f32 %v3487_v43, %v1321_v46  ;;  %v3314_v46 = vld [vmem:[#allocation8 + $0xa8] sm:$0xff] }
 0x477   : > { %1509 = vmatpush.bf16.msrb.mxu3 %v3314_v46 }
 0x478   : > { %v1358_v39 = vmax.f32 %v1322_v33, 0.0 }
 0x47d   : > { %v1323_v47 = vpop.f32.mrf.mxu1 }
 0x47e   : > { %v1324_v30 = vadd.f32 %v3487_v43, %v1323_v47  ;;  %v3313_v47 = vld [vmem:[#allocation8 + $0xa0] sm:$0xff] }
 0x47f   : > { %1510 = vmatpush.bf16.msrb.mxu3 %v3313_v47 }
 0x480   : > { %v1359_v36 = vmax.f32 %v1324_v30, 0.0 }
 0x482   : > { %v1373_v41 = vpack.c.bf16 %v1359_v36, %v1358_v39 }
 0x485   : > { %v1326_v48 = vpop.f32.mrf.mxu1 }
 0x486   : > { %v1327_v28 = vadd.f32 %v3487_v43, %v1326_v48  ;;  %v3312_v48 = vld [vmem:[#allocation8 + $0x98] sm:$0xff] }
 0x487   : > { %1511 = vmatpush.bf16.msrb.mxu3 %v3312_v48 }
 0x488   : > { %v1360_v34 = vmax.f32 %v1327_v28, 0.0 }
 0x48d   : > { %v1328_v49 = vpop.f32.mrf.mxu1 }
 0x48e   : > { %v1329_v25 = vadd.f32 %v3487_v43, %v1328_v49  ;;  %v1372_v49 = vpack.c.bf16 %v1357_v40, %v1356_v42 }
 0x490   : > { %v1361_v31 = vmax.f32 %v1329_v25, 0.0 }
 0x492   : > { %v1374_v37 = vpack.c.bf16 %v1361_v31, %v1360_v34 }
 0x495   : > { %v1331_v50 = vpop.f32.mrf.mxu1 }
 0x496   : > { %v1332_v22 = vadd.f32 %v3487_v43, %v1331_v50 }
 0x498   : > { %v1362_v29 = vmax.f32 %v1332_v22, 0.0 }
 0x49d   : > { %v1333_v51 = vpop.f32.mrf.mxu1 }
 0x49e   : > { %v1334_v18 = vadd.f32 %v3487_v43, %v1333_v51 }
 0x4a0   : > { %v1363_v26 = vmax.f32 %v1334_v18, 0.0 }
 0x4a2   : > { %v1375_v32 = vpack.c.bf16 %v1363_v26, %v1362_v29 }
 0x4a5   : > { %v1336_v52 = vpop.f32.mrf.mxu1 }
 0x4a6   : > { %v1337_v16 = vadd.f32 %v3487_v43, %v1336_v52 }
 0x4a8   : > { %v1364_v24 = vmax.f32 %v1337_v16, 0.0  ;;  %v3317_v16 = vld [vmem:[#allocation11 + $0x80] sm:$0xff] }
 0x4ad   : > { %v1338_v53 = vpop.f32.mrf.mxu1 }
 0x4ae   : > { %v1339_v13 = vadd.f32 %v3487_v43, %v1338_v53 }
 0x4b0   : > { %v1365_v19 = vmax.f32 %v1339_v13, 0.0  ;;  %v3319_v13 = vld [vmem:[#allocation11 + $0x90] sm:$0xff] }
 0x4b2   : > { %v1376_v27 = vpack.c.bf16 %v1365_v19, %v1364_v24  ;;  %v3488_v19 = vld [vmem:[#allocation10 + $0x2] ss:$0 sm:$0xff] }
 0x4b5   : > { %v1341_v54 = vpop.f32.mrf.mxu1 }
 0x4b6   : > { %v1342_v6 = vadd.f32 %v3487_v43, %v1341_v54 }
 0x4b8   : > { %v1366_v17 = vmax.f32 %v1342_v6, 0.0  ;;  %v3320_v6 = vld [vmem:[#allocation11 + $0x98] sm:$0xff] }
 0x4bd   : > { %v1343_v55 = vpop.f32.mrf.mxu1 }
 0x4be   : > { %v1344_v3 = vadd.f32 %v3487_v43, %v1343_v55 }
 0x4c0   : > { %v1367_v57 = vmax.f32 %v1344_v3, 0.0  ;;  %v3321_v3 = vld [vmem:[#allocation11 + $0xa0] sm:$0xff] }
 0x4c2   : > { %v1377_v21 = vpack.c.bf16 %v1367_v57, %v1366_v17  ;;  %v3318_v57 = vld [vmem:[#allocation11 + $0x88] sm:$0xff] }
 0x4c5   : > { %v1346_v56 = vpop.f32.mrf.mxu1 }
 0x4c6   : > { %v1347_v0 = vadd.f32 %v3487_v43, %v1346_v56 }
 0x4c8   : > { %v1368_v7 = vmax.f32 %v1347_v0, 0.0  ;;  %v3323_v0 = vld [vmem:[#allocation11 + $0xb0] sm:$0xff] }
 0x4cd   : > { %v1348_v63 = vpop.f32.mrf.mxu1 }
 0x4ce   : > { %v1349_v61 = vadd.f32 %v3487_v43, %v1348_v63 }
 0x4d0   : > { %v1369_v4 = vmax.f32 %v1349_v61, 0.0 }
 0x4d2   : > { %v1378_v14 = vpack.c.bf16 %v1369_v4, %v1368_v7 }
 0x4d5   : > { %v1351_v59 = vpop.f32.mrf.mxu1 }
 0x4d6   : > { %v1352_v58 = vadd.f32 %v3487_v43, %v1351_v59 }
 0x4d8   : > { %v1370_v1 = vmax.f32 %v1352_v58, 0.0 }
 0x4dd   : > { %v1353_v60 = vpop.f32.mrf.mxu1 }
 0x4de   : > { %v1354_v62 = vadd.f32 %v3487_v43, %v1353_v60 }
 0x4e0   : > { %v1371_v2 = vmax.f32 %v1354_v62, 0.0  ;;  %v3324_v62 = vld [vmem:[#allocation11 + $0xb8] sm:$0xff] }
 0x4e1   : > { %1650 = vmatpush.bf16.msra.mxu0 %v3324_v62 }
 0x4e2   : > { %v1379_v5 = vpack.c.bf16 %v1371_v2, %v1370_v1  ;;  %v3322_v2 = vld [vmem:[#allocation11 + $0xa8] sm:$0xff] }
 0x4e4   : > { %1380 = vmatpush.bf16.msrb.mxu2 %v1379_v5 }
 0x4e5   : > { %1651 = vmatpush.bf16.msra.mxu0 %v3323_v0 }
 0x4e8   : > { %1381 = vmatpush.bf16.msrb.mxu2 %v1378_v14 }
 0x4e9   : > { %1652 = vmatpush.bf16.msra.mxu0 %v3322_v2 }
 0x4ec   : > { %1382 = vmatpush.bf16.msrb.mxu2 %v1377_v21 }
 0x4ed   : > { %1653 = vmatpush.bf16.msra.mxu0 %v3321_v3 }
 0x4f0   : > { %1383 = vmatpush.bf16.msrb.mxu2 %v1376_v27 }
 0x4f1   : > { %1654 = vmatpush.bf16.msra.mxu0 %v3320_v6 }
 0x4f4   : > { %1384 = vmatpush.bf16.msrb.mxu2 %v1375_v32 }
 0x4f5   : > { %1655 = vmatpush.bf16.msra.mxu0 %v3319_v13 }
 0x4f8   : > { %1385 = vmatpush.bf16.msrb.mxu2 %v1374_v37 }
 0x4f9   : > { %1656 = vmatpush.bf16.msra.mxu0 %v3318_v57 }
 0x4fc   : > { %1386 = vmatpush.bf16.msrb.mxu2 %v1373_v41 }
 0x4fd   : > { %1657 = vmatpush.bf16.msra.mxu0 %v3317_v16 }
 0x500   : > { %1387 = vmatpush.bf16.msrb.mxu2 %v1372_v49 }
 0x503   : > { %1388 = vmatmul.bf16.vlgmr.msrb.gmra.mxu2 %v4119_v8  ;;  %v3311_v8 = vld [vmem:[#allocation8 + $0x90] sm:$0xff] }
 0x504   : > { %1512 = vmatpush.bf16.msrb.mxu3 %v3311_v8 }
 0x513   : > { %1393 = vmatmul.bf16.gmra.mxu2 %v4123_v9  ;;  %v3310_v9 = vld [vmem:[#allocation8 + $0x88] sm:$0xff] }
 0x514   : > { %1513 = vmatpush.bf16.msrb.mxu3 %v3310_v9 }
 0x523   : > { %1398 = vmatmul.bf16.gmra.mxu2 %v4127_v10  ;;  %v3309_v10 = vld [vmem:[#allocation8 + $0x80] sm:$0xff] }
 0x524   : > { %1514 = vmatpush.bf16.msrb.mxu3 %v3309_v10 }
 0x533   : > { %1403 = vmatmul.bf16.gmra.mxu2 %v4131_v11 }
 0x543   : > { %1408 = vmatmul.bf16.gmra.mxu2 %v4135_v12 }
 0x553   : > { %1413 = vmatmul.bf16.gmra.mxu2 %v4139_v15 }
 0x563   : > { %1418 = vmatmul.bf16.gmra.mxu2 %v4143_v20 }
 0x573   : > { %1423 = vmatmul.bf16.gmra.mxu2 %v4147_v23 }
 0x586   : > { %v1389_v11 = vpop.f32.mrf.mxu2 }
 0x58e   : > { %v1391_v12 = vpop.f32.mrf.mxu2 }
 0x58f   : > { %v1429_v15 = vpack.c.bf16 %v1391_v12, %v1389_v11 }
 0x591   : > { %1515 = vmatmul.bf16.vlgmr.msrb.gmra.mxu3 %v1429_v15 }
 0x596   : > { %v1394_v50 = vpop.f32.mrf.mxu2 }
 0x59e   : > { %v1396_v51 = vpop.f32.mrf.mxu2 }
 0x59f   : > { %v1430_v52 = vpack.c.bf16 %v1396_v51, %v1394_v50 }
 0x5a1   : > { %1520 = vmatmul.bf16.gmra.mxu3 %v1430_v52 }
 0x5a6   : > { %v1399_v53 = vpop.f32.mrf.mxu2 }
 0x5ae   : > { %v1401_v54 = vpop.f32.mrf.mxu2 }
 0x5af   : > { %v1431_v55 = vpack.c.bf16 %v1401_v54, %v1399_v53 }
 0x5b1   : > { %1525 = vmatmul.bf16.gmra.mxu3 %v1431_v55 }
 0x5b6   : > { %v1404_v20 = vpop.f32.mrf.mxu2 }
 0x5be   : > { %v1406_v56 = vpop.f32.mrf.mxu2 }
 0x5bf   : > { %v1432_v63 = vpack.c.bf16 %v1406_v56, %v1404_v20 }
 0x5c1   : > { %1530 = vmatmul.bf16.gmra.mxu3 %v1432_v63 }
 0x5c6   : > { %v1409_v59 = vpop.f32.mrf.mxu2 }
 0x5ce   : > { %v1411_v43 = vpop.f32.mrf.mxu2 }
 0x5cf   : > { %v1433_v58 = vpack.c.bf16 %v1411_v43, %v1409_v59 }
 0x5d1   : > { %1535 = vmatmul.bf16.gmra.mxu3 %v1433_v58 }
 0x5d6   : > { %v1414_v23 = vpop.f32.mrf.mxu2 }
 0x5de   : > { %v1416_v60 = vpop.f32.mrf.mxu2 }
 0x5df   : > { %v1434_v61 = vpack.c.bf16 %v1416_v60, %v1414_v23 }
 0x5e1   : > { %1540 = vmatmul.bf16.gmra.mxu3 %v1434_v61 }
 0x5e6   : > { %v1419_v1 = vpop.f32.mrf.mxu2 }
 0x5ee   : > { %v1421_v4 = vpop.f32.mrf.mxu2 }
 0x5ef   : > { %v1435_v5 = vpack.c.bf16 %v1421_v4, %v1419_v1 }
 0x5f1   : > { %1545 = vmatmul.bf16.gmra.mxu3 %v1435_v5 }
 0x5f6   : > { %v1424_v7 = vpop.f32.mrf.mxu2 }
 0x5fe   : > { %v1426_v14 = vpop.f32.mrf.mxu2 }
 0x5ff   : > { %v1436_v17 = vpack.c.bf16 %v1426_v14, %v1424_v7 }
 0x601   : > { %1550 = vmatmul.bf16.gmra.mxu3 %v1436_v17 }
 0x614   : > { %v1516_v18 = vpop.f32.mrf.mxu3 }
 0x615   : > { %v1517_v21 = vadd.f32 %v3488_v19, %v1516_v18 }
 0x617   : > { %v1556_v25 = vmax.f32 %v1517_v21, 0.0 }
 0x61c   : > { %v1518_v22 = vpop.f32.mrf.mxu3 }
 0x61d   : > { %v1519_v24 = vadd.f32 %v3488_v19, %v1518_v22 }
 0x61f   : > { %v1557_v26 = vmax.f32 %v1519_v24, 0.0 }
 0x621   : > { %v1572_v27 = vpack.c.bf16 %v1557_v26, %v1556_v25 }
 0x623   : > { %1658 = vmatmul.bf16.vlgmr.msra.gmra.mxu0 %v1572_v27 }
 0x624   : > { %v1521_v28 = vpop.f32.mrf.mxu3 }
 0x625   : > { %v1522_v29 = vadd.f32 %v3488_v19, %v1521_v28 }
 0x627   : > { %v1558_v32 = vmax.f32 %v1522_v29, 0.0 }
 0x62c   : > { %v1523_v30 = vpop.f32.mrf.mxu3 }
 0x62d   : > { %v1524_v31 = vadd.f32 %v3488_v19, %v1523_v30 }
 0x62f   : > { %v1559_v33 = vmax.f32 %v1524_v31, 0.0 }
 0x631   : > { %v1573_v34 = vpack.c.bf16 %v1559_v33, %v1558_v32 }
 0x633   : > { %1663 = vmatmul.bf16.gmra.mxu0 %v1573_v34 }
 0x634   : > { %v1526_v35 = vpop.f32.mrf.mxu3 }
 0x635   : > { %v1527_v36 = vadd.f32 %v3488_v19, %v1526_v35 }
 0x637   : > { %v1560_v39 = vmax.f32 %v1527_v36, 0.0 }
 0x63c   : > { %v1528_v37 = vpop.f32.mrf.mxu3 }
 0x63d   : > { %v1529_v38 = vadd.f32 %v3488_v19, %v1528_v37 }
 0x63f   : > { %v1561_v40 = vmax.f32 %v1529_v38, 0.0 }
 0x641   : > { %v1574_v41 = vpack.c.bf16 %v1561_v40, %v1560_v39 }
 0x643   : > { %1668 = vmatmul.bf16.gmra.mxu0 %v1574_v41 }
 0x644   : > { %v1531_v42 = vpop.f32.mrf.mxu3 }
 0x645   : > { %v1532_v49 = vadd.f32 %v3488_v19, %v1531_v42 }
 0x647   : > { %v1562_v46 = vmax.f32 %v1532_v49, 0.0 }
 0x64c   : > { %v1533_v45 = vpop.f32.mrf.mxu3 }
 0x64d   : > { %v1534_v44 = vadd.f32 %v3488_v19, %v1533_v45 }
 0x64f   : > { %v1563_v47 = vmax.f32 %v1534_v44, 0.0 }
 0x651   : > { %v1575_v48 = vpack.c.bf16 %v1563_v47, %v1562_v46 }
 0x653   : > { %1673 = vmatmul.bf16.gmra.mxu0 %v1575_v48 }
 0x654   : > { %v1536_v8 = vpop.f32.mrf.mxu3 }
 0x655   : > { %v1537_v9 = vadd.f32 %v3488_v19, %v1536_v8 }
 0x657   : > { %v1564_v12 = vmax.f32 %v1537_v9, 0.0 }
 0x65c   : > { %v1538_v10 = vpop.f32.mrf.mxu3 }
 0x65d   : > { %v1539_v11 = vadd.f32 %v3488_v19, %v1538_v10 }
 0x65f   : > { %v1565_v15 = vmax.f32 %v1539_v11, 0.0 }
 0x661   : > { %v1576_v50 = vpack.c.bf16 %v1565_v15, %v1564_v12 }
 0x663   : > { %1678 = vmatmul.bf16.gmra.mxu0 %v1576_v50 }
 0x664   : > { %v1541_v51 = vpop.f32.mrf.mxu3 }
 0x665   : > { %v1542_v52 = vadd.f32 %v3488_v19, %v1541_v51 }
 0x667   : > { %v1566_v55 = vmax.f32 %v1542_v52, 0.0 }
 0x66c   : > { %v1543_v53 = vpop.f32.mrf.mxu3 }
 0x66d   : > { %v1544_v54 = vadd.f32 %v3488_v19, %v1543_v53 }
 0x66f   : > { %v1567_v20 = vmax.f32 %v1544_v54, 0.0 }
 0x671   : > { %v1577_v56 = vpack.c.bf16 %v1567_v20, %v1566_v55 }
 0x673   : > { %1683 = vmatmul.bf16.gmra.mxu0 %v1577_v56 }
 0x674   : > { %v1546_v63 = vpop.f32.mrf.mxu3 }
 0x675   : > { %v1547_v59 = vadd.f32 %v3488_v19, %v1546_v63 }
 0x677   : > { %v1568_v23 = vmax.f32 %v1547_v59, 0.0 }
 0x67c   : > { %v1548_v43 = vpop.f32.mrf.mxu3 }
 0x67d   : > { %v1549_v58 = vadd.f32 %v3488_v19, %v1548_v43 }
 0x67f   : > { %v1569_v60 = vmax.f32 %v1549_v58, 0.0 }
 0x681   : > { %v1578_v61 = vpack.c.bf16 %v1569_v60, %v1568_v23 }
 0x683   : > { %1688 = vmatmul.bf16.gmra.mxu0 %v1578_v61 }
 0x684   : > { %v1551_v62 = vpop.f32.mrf.mxu3 }
 0x685   : > { %v1552_v0 = vadd.f32 %v3488_v19, %v1551_v62  ;;  %v4176_v62 = vld [vmem:[%s4097_s25] sm:$0xff] }
 0x687   : > { %v1570_v3 = vmax.f32 %v1552_v0, 0.0  ;;  %v4180_v0 = vld [vmem:[%s4097_s25 + $0x8] sm:$0xff] }
 0x68c   : > { %v1553_v1 = vpop.f32.mrf.mxu3 }
 0x68d   : > { %v1554_v2 = vadd.f32 %v3488_v19, %v1553_v1  ;;  %v3489_v19 = vld [vmem:[%s4268_s6 + $0x2] ss:$0 sm:$0xff]  ;;  %v4184_v1 = vld [vmem:[%s4097_s25 + $0x10] sm:$0xff] }
 0x68f   : > { %v1571_v4 = vmax.f32 %v1554_v2, 0.0  ;;  %v4188_v2 = vld [vmem:[%s4097_s25 + $0x18] sm:$0xff] }
 0x691   : > { %v1579_v5 = vpack.c.bf16 %v1571_v4, %v1570_v3  ;;  %v4192_v3 = vld [vmem:[%s4097_s25 + $0x20] sm:$0xff] }
 0x692   : > { %v3332_v4 = vld [vmem:[#allocation8 + $0xf8] sm:$0xff] }
 0x693   : > { %1693 = vmatmul.bf16.gmra.mxu0 %v1579_v5  ;;  %1850 = vmatpush.bf16.msra.mxu2 %v3332_v4  ;;  %v3331_v5 = vld [vmem:[#allocation8 + $0xf0] sm:$0xff] }
 0x697   : > { %1851 = vmatpush.bf16.msra.mxu2 %v3331_v5 }
 0x6a0   : > { %v1659_v6 = vpop.f32.mrf.mxu0 }
 0x6a1   : > { %v1660_v59 = vadd.f32 %v3489_v19, %v1659_v6  ;;  %v3330_v6 = vld [vmem:[#allocation8 + $0xe8] sm:$0xff] }
 0x6a2   : > { %1852 = vmatpush.bf16.msra.mxu2 %v3330_v6 }
 0x6a3   : > { %v1699_v60 = vmax.f32 %v1660_v59, 0.0 }
 0x6a8   : > { %v1661_v7 = vpop.f32.mrf.mxu0 }
 0x6a9   : > { %v1662_v20 = vadd.f32 %v3489_v19, %v1661_v7  ;;  %v4196_v7 = vld [vmem:[%s4097_s25 + $0x28] sm:$0xff] }
 0x6ab   : > { %v1700_v58 = vmax.f32 %v1662_v20, 0.0 }
 0x6ad   : > { %v1715_v61 = vpack.c.bf16 %v1700_v58, %v1699_v60 }
 0x6b0   : > { %v1664_v13 = vpop.f32.mrf.mxu0 }
 0x6b1   : > { %v1665_v54 = vadd.f32 %v3489_v19, %v1664_v13  ;;  %v3329_v13 = vld [vmem:[#allocation8 + $0xe0] sm:$0xff] }
 0x6b2   : > { %1853 = vmatpush.bf16.msra.mxu2 %v3329_v13 }
 0x6b3   : > { %v1701_v43 = vmax.f32 %v1665_v54, 0.0 }
 0x6b8   : > { %v1666_v57 = vpop.f32.mrf.mxu0 }
 0x6b9   : > { %v1667_v51 = vadd.f32 %v3489_v19, %v1666_v57  ;;  %v3328_v57 = vld [vmem:[#allocation8 + $0xd8] sm:$0xff] }
 0x6ba   : > { %1854 = vmatpush.bf16.msra.mxu2 %v3328_v57 }
 0x6bb   : > { %v1702_v56 = vmax.f32 %v1667_v51, 0.0 }
 0x6bd   : > { %v1716_v23 = vpack.c.bf16 %v1702_v56, %v1701_v43 }
 0x6c0   : > { %v1669_v14 = vpop.f32.mrf.mxu0 }
 0x6c1   : > { %v1670_v15 = vadd.f32 %v3489_v19, %v1669_v14  ;;  %v3327_v14 = vld [vmem:[#allocation8 + $0xd0] sm:$0xff] }
 0x6c2   : > { %1855 = vmatpush.bf16.msra.mxu2 %v3327_v14 }
 0x6c3   : > { %v1703_v55 = vmax.f32 %v1670_v15, 0.0 }
 0x6c8   : > { %v1671_v16 = vpop.f32.mrf.mxu0 }
 0x6c9   : > { %v1672_v10 = vadd.f32 %v3489_v19, %v1671_v16  ;;  %v3326_v16 = vld [vmem:[#allocation8 + $0xc8] sm:$0xff] }
 0x6ca   : > { %1856 = vmatpush.bf16.msra.mxu2 %v3326_v16 }
 0x6cb   : > { %v1704_v52 = vmax.f32 %v1672_v10, 0.0 }
 0x6cd   : > { %v1717_v63 = vpack.c.bf16 %v1704_v52, %v1703_v55 }
 0x6d0   : > { %v1674_v17 = vpop.f32.mrf.mxu0 }
 0x6d1   : > { %v1675_v8 = vadd.f32 %v3489_v19, %v1674_v17  ;;  %v4200_v17 = vld [vmem:[%s4097_s25 + $0x30] sm:$0xff] }
 0x6d3   : > { %v1705_v50 = vmax.f32 %v1675_v8, 0.0  ;;  %v3335_v8 = vld [vmem:[#allocation11 + $0xd0] sm:$0xff] }
 0x6d8   : > { %v1676_v18 = vpop.f32.mrf.mxu0 }
 0x6d9   : > { %v1677_v46 = vadd.f32 %v3489_v19, %v1676_v18  ;;  %v3325_v18 = vld [vmem:[#allocation8 + $0xc0] sm:$0xff] }
 0x6da   : > { %1857 = vmatpush.bf16.msra.mxu2 %v3325_v18 }
 0x6db   : > { %v1706_v11 = vmax.f32 %v1677_v46, 0.0 }
 0x6dd   : > { %v1718_v53 = vpack.c.bf16 %v1706_v11, %v1705_v50  ;;  %v3333_v11 = vld [vmem:[#allocation11 + $0xc0] sm:$0xff]  ;;  %v3490_v50 = vld [vmem:[#allocation10 + $0x3] ss:$0 sm:$0xff] }
 0x6e0   : > { %v1679_v21 = vpop.f32.mrf.mxu0 }
 0x6e1   : > { %v1680_v45 = vadd.f32 %v3489_v19, %v1679_v21  ;;  %v4204_v21 = vld [vmem:[%s4097_s25 + $0x38] sm:$0xff] }
 0x6e3   : > { %v1707_v9 = vmax.f32 %v1680_v45, 0.0  ;;  %v3337_v45 = vld [vmem:[#allocation11 + $0xe0] sm:$0xff] }
 0x6e8   : > { %v1681_v22 = vpop.f32.mrf.mxu0 }
 0x6e9   : > { %v1682_v41 = vadd.f32 %v3489_v19, %v1681_v22 }
 0x6eb   : > { %v1708_v47 = vmax.f32 %v1682_v41, 0.0  ;;  %v3339_v41 = vld [vmem:[#allocation11 + $0xf0] sm:$0xff] }
 0x6ed   : > { %v1719_v12 = vpack.c.bf16 %v1708_v47, %v1707_v9  ;;  %v3336_v47 = vld [vmem:[#allocation11 + $0xd8] sm:$0xff]  ;;  %v3334_v9 = vld [vmem:[#allocation11 + $0xc8] sm:$0xff] }
 0x6f0   : > { %v1684_v24 = vpop.f32.mrf.mxu0 }
 0x6f1   : > { %v1685_v39 = vadd.f32 %v3489_v19, %v1684_v24 }
 0x6f3   : > { %v1709_v44 = vmax.f32 %v1685_v39, 0.0 }
 0x6f8   : > { %v1686_v25 = vpop.f32.mrf.mxu0 }
 0x6f9   : > { %v1687_v36 = vadd.f32 %v3489_v19, %v1686_v25 }
 0x6fb   : > { %v1710_v42 = vmax.f32 %v1687_v36, 0.0 }
 0x6fd   : > { %v1720_v48 = vpack.c.bf16 %v1710_v42, %v1709_v44 }
 0x700   : > { %v1689_v26 = vpop.f32.mrf.mxu0 }
 0x701   : > { %v1690_v33 = vadd.f32 %v3489_v19, %v1689_v26 }
 0x703   : > { %v1711_v40 = vmax.f32 %v1690_v33, 0.0 }
 0x708   : > { %v1691_v27 = vpop.f32.mrf.mxu0 }
 0x709   : > { %v1692_v31 = vadd.f32 %v3489_v19, %v1691_v27 }
 0x70b   : > { %v1712_v37 = vmax.f32 %v1692_v31, 0.0 }
 0x70d   : > { %v1721_v49 = vpack.c.bf16 %v1712_v37, %v1711_v40  ;;  %v3340_v40 = vld [vmem:[#allocation11 + $0xf8] sm:$0xff] }
 0x70e   : > { %1993 = vmatpush.bf16.msra.mxu3 %v3340_v40 }
 0x710   : > { %v1694_v28 = vpop.f32.mrf.mxu0 }
 0x711   : > { %v1695_v29 = vadd.f32 %v3489_v19, %v1694_v28 }
 0x712   : > { %1994 = vmatpush.bf16.msra.mxu3 %v3339_v41 }
 0x713   : > { %v1713_v34 = vmax.f32 %v1695_v29, 0.0 }
 0x718   : > { %v1696_v30 = vpop.f32.mrf.mxu0 }
 0x719   : > { %v1697_v32 = vadd.f32 %v3489_v19, %v1696_v30 }
 0x71b   : > { %v1714_v35 = vmax.f32 %v1697_v32, 0.0 }
 0x71d   : > { %v1722_v38 = vpack.c.bf16 %v1714_v35, %v1713_v34 }
 0x71f   : > { %1723 = vmatpush.bf16.msra.mxu1 %v1722_v38 }
 0x723   : > { %1724 = vmatpush.bf16.msra.mxu1 %v1721_v49  ;;  %v3338_v49 = vld [vmem:[#allocation11 + $0xe8] sm:$0xff] }
 0x724   : > { %1995 = vmatpush.bf16.msra.mxu3 %v3338_v49 }
 0x727   : > { %1725 = vmatpush.bf16.msra.mxu1 %v1720_v48 }
 0x728   : > { %1996 = vmatpush.bf16.msra.mxu3 %v3337_v45 }
 0x72b   : > { %1726 = vmatpush.bf16.msra.mxu1 %v1719_v12 }
 0x72c   : > { %1997 = vmatpush.bf16.msra.mxu3 %v3336_v47 }
 0x72f   : > { %1727 = vmatpush.bf16.msra.mxu1 %v1718_v53 }
 0x730   : > { %1998 = vmatpush.bf16.msra.mxu3 %v3335_v8 }
 0x733   : > { %1728 = vmatpush.bf16.msra.mxu1 %v1717_v63 }
 0x734   : > { %1999 = vmatpush.bf16.msra.mxu3 %v3334_v9 }
 0x737   : > { %1729 = vmatpush.bf16.msra.mxu1 %v1716_v23 }
 0x738   : > { %2000 = vmatpush.bf16.msra.mxu3 %v3333_v11 }
 0x73b   : > { %1730 = vmatpush.bf16.msra.mxu1 %v1715_v61 }
 0x73e   : > { %1731 = vmatmul.bf16.vlgmr.msra.gmra.mxu1 %v4176_v62 }
 0x74e   : > { %1736 = vmatmul.bf16.gmra.mxu1 %v4180_v0 }
 0x75e   : > { %1741 = vmatmul.bf16.gmra.mxu1 %v4184_v1 }
 0x76e   : > { %1746 = vmatmul.bf16.gmra.mxu1 %v4188_v2 }
 0x77e   : > { %1751 = vmatmul.bf16.gmra.mxu1 %v4192_v3 }
 0x78e   : > { %1756 = vmatmul.bf16.gmra.mxu1 %v4196_v7 }
 0x79e   : > { %1761 = vmatmul.bf16.gmra.mxu1 %v4200_v17 }
 0x7ae   : > { %1766 = vmatmul.bf16.gmra.mxu1 %v4204_v21 }
 0x7bb   : > { %v1732_v22 = vpop.f32.mrf.mxu1 }
 0x7c3   : > { %v1734_v24 = vpop.f32.mrf.mxu1 }
 0x7c4   : > { %v1772_v25 = vpack.c.bf16 %v1734_v24, %v1732_v22 }
 0x7c6   : > { %1858 = vmatmul.bf16.vlgmr.msra.gmra.mxu2 %v1772_v25 }
 0x7cb   : > { %v1737_v26 = vpop.f32.mrf.mxu1 }
 0x7d3   : > { %v1739_v27 = vpop.f32.mrf.mxu1 }
 0x7d4   : > { %v1773_v28 = vpack.c.bf16 %v1739_v27, %v1737_v26 }
 0x7d6   : > { %1863 = vmatmul.bf16.gmra.mxu2 %v1773_v28 }
 0x7db   : > { %v1742_v19 = vpop.f32.mrf.mxu1 }
 0x7e3   : > { %v1744_v29 = vpop.f32.mrf.mxu1 }
 0x7e4   : > { %v1774_v30 = vpack.c.bf16 %v1744_v29, %v1742_v19 }
 0x7e6   : > { %1868 = vmatmul.bf16.gmra.mxu2 %v1774_v30 }
 0x7eb   : > { %v1747_v31 = vpop.f32.mrf.mxu1 }
 0x7f3   : > { %v1749_v32 = vpop.f32.mrf.mxu1 }
 0x7f4   : > { %v1775_v33 = vpack.c.bf16 %v1749_v32, %v1747_v31 }
 0x7f6   : > { %1873 = vmatmul.bf16.gmra.mxu2 %v1775_v33 }
 0x7fb   : > { %v1752_v34 = vpop.f32.mrf.mxu1 }
 0x803   : > { %v1754_v35 = vpop.f32.mrf.mxu1 }
 0x804   : > { %v1776_v36 = vpack.c.bf16 %v1754_v35, %v1752_v34 }
 0x806   : > { %1878 = vmatmul.bf16.gmra.mxu2 %v1776_v36 }
 0x80b   : > { %v1757_v37 = vpop.f32.mrf.mxu1 }
 0x813   : > { %v1759_v38 = vpop.f32.mrf.mxu1 }
 0x814   : > { %v1777_v39 = vpack.c.bf16 %v1759_v38, %v1757_v37 }
 0x816   : > { %1883 = vmatmul.bf16.gmra.mxu2 %v1777_v39 }
 0x81b   : > { %v1762_v42 = vpop.f32.mrf.mxu1 }
 0x823   : > { %v1764_v44 = vpop.f32.mrf.mxu1 }
 0x824   : > { %v1778_v46 = vpack.c.bf16 %v1764_v44, %v1762_v42 }
 0x826   : > { %1888 = vmatmul.bf16.gmra.mxu2 %v1778_v46 }
 0x82b   : > { %v1767_v48 = vpop.f32.mrf.mxu1 }
 0x833   : > { %v1769_v10 = vpop.f32.mrf.mxu1 }
 0x834   : > { %v1779_v12 = vpack.c.bf16 %v1769_v10, %v1767_v48 }
 0x836   : > { %1893 = vmatmul.bf16.gmra.mxu2 %v1779_v12 }
 0x849   : > { %v1859_v15 = vpop.f32.mrf.mxu2 }
 0x84a   : > { %v1860_v51 = vadd.f32 %v3490_v50, %v1859_v15 }
 0x84c   : > { %v1899_v54 = vmax.f32 %v1860_v51, 0.0 }
 0x851   : > { %v1861_v52 = vpop.f32.mrf.mxu2 }
 0x852   : > { %v1862_v53 = vadd.f32 %v3490_v50, %v1861_v52  ;;  %v3491_v52 = vld [vmem:[%s4268_s6 + $0x3] ss:$0 sm:$0xff] }
 0x854   : > { %v1900_v55 = vmax.f32 %v1862_v53, 0.0 }
 0x856   : > { %v1915_v20 = vpack.c.bf16 %v1900_v55, %v1899_v54 }
 0x858   : > { %2001 = vmatmul.bf16.vlgmr.msra.gmra.mxu3 %v1915_v20 }
 0x859   : > { %v1864_v56 = vpop.f32.mrf.mxu2 }
 0x85a   : > { %v1865_v63 = vadd.f32 %v3490_v50, %v1864_v56 }
 0x85c   : > { %v1901_v58 = vmax.f32 %v1865_v63, 0.0 }
 0x861   : > { %v1866_v59 = vpop.f32.mrf.mxu2 }
 0x862   : > { %v1867_v43 = vadd.f32 %v3490_v50, %v1866_v59 }
 0x864   : > { %v1902_v23 = vmax.f32 %v1867_v43, 0.0 }
 0x866   : > { %v1916_v60 = vpack.c.bf16 %v1902_v23, %v1901_v58 }
 0x868   : > { %2006 = vmatmul.bf16.gmra.mxu3 %v1916_v60 }
 0x869   : > { %v1869_v61 = vpop.f32.mrf.mxu2 }
 0x86a   : > { %v1870_v4 = vadd.f32 %v3490_v50, %v1869_v61 }
 0x86c   : > { %v1903_v13 = vmax.f32 %v1870_v4, 0.0 }
 0x871   : > { %v1871_v5 = vpop.f32.mrf.mxu2 }
 0x872   : > { %v1872_v6 = vadd.f32 %v3490_v50, %v1871_v5 }
 0x874   : > { %v1904_v57 = vmax.f32 %v1872_v6, 0.0 }
 0x876   : > { %v1917_v14 = vpack.c.bf16 %v1904_v57, %v1903_v13 }
 0x878   : > { %2011 = vmatmul.bf16.gmra.mxu3 %v1917_v14 }
 0x879   : > { %v1874_v16 = vpop.f32.mrf.mxu2 }
 0x87a   : > { %v1875_v18 = vadd.f32 %v3490_v50, %v1874_v16 }
 0x87c   : > { %v1905_v25 = vmax.f32 %v1875_v18, 0.0 }
 0x881   : > { %v1876_v22 = vpop.f32.mrf.mxu2 }
 0x882   : > { %v1877_v24 = vadd.f32 %v3490_v50, %v1876_v22 }
 0x884   : > { %v1906_v26 = vmax.f32 %v1877_v24, 0.0 }
 0x886   : > { %v1918_v27 = vpack.c.bf16 %v1906_v26, %v1905_v25 }
 0x888   : > { %2016 = vmatmul.bf16.gmra.mxu3 %v1918_v27 }
 0x889   : > { %v1879_v28 = vpop.f32.mrf.mxu2 }
 0x88a   : > { %v1880_v19 = vadd.f32 %v3490_v50, %v1879_v28 }
 0x88c   : > { %v1907_v31 = vmax.f32 %v1880_v19, 0.0 }
 0x891   : > { %v1881_v29 = vpop.f32.mrf.mxu2 }
 0x892   : > { %v1882_v30 = vadd.f32 %v3490_v50, %v1881_v29 }
 0x894   : > { %v1908_v32 = vmax.f32 %v1882_v30, 0.0 }
 0x896   : > { %v1919_v33 = vpack.c.bf16 %v1908_v32, %v1907_v31 }
 0x898   : > { %2021 = vmatmul.bf16.gmra.mxu3 %v1919_v33 }
 0x899   : > { %v1884_v34 = vpop.f32.mrf.mxu2 }
 0x89a   : > { %v1885_v35 = vadd.f32 %v3490_v50, %v1884_v34 }
 0x89c   : > { %v1909_v38 = vmax.f32 %v1885_v35, 0.0 }
 0x8a1   : > { %v1886_v36 = vpop.f32.mrf.mxu2 }
 0x8a2   : > { %v1887_v37 = vadd.f32 %v3490_v50, %v1886_v36 }
 0x8a4   : > { %v1910_v39 = vmax.f32 %v1887_v37, 0.0 }
 0x8a6   : > { %v1920_v40 = vpack.c.bf16 %v1910_v39, %v1909_v38 }
 0x8a8   : > { %2026 = vmatmul.bf16.gmra.mxu3 %v1920_v40 }
 0x8a9   : > { %v1889_v41 = vpop.f32.mrf.mxu2 }
 0x8aa   : > { %v1890_v42 = vadd.f32 %v3490_v50, %v1889_v41 }
 0x8ac   : > { %v1911_v44 = vmax.f32 %v1890_v42, 0.0 }
 0x8b1   : > { %v1891_v49 = vpop.f32.mrf.mxu2 }
 0x8b2   : > { %v1892_v45 = vadd.f32 %v3490_v50, %v1891_v49 }
 0x8b4   : > { %v1912_v46 = vmax.f32 %v1892_v45, 0.0 }
 0x8b6   : > { %v1921_v47 = vpack.c.bf16 %v1912_v46, %v1911_v44 }
 0x8b8   : > { %2031 = vmatmul.bf16.gmra.mxu3 %v1921_v47 }
 0x8b9   : > { %v1894_v48 = vpop.f32.mrf.mxu2 }
 0x8ba   : > { %v1895_v8 = vadd.f32 %v3490_v50, %v1894_v48 }
 0x8bc   : > { %v1913_v11 = vmax.f32 %v1895_v8, 0.0 }
 0x8c1   : > { %v1896_v9 = vpop.f32.mrf.mxu2 }
 0x8c2   : > { %v1897_v10 = vadd.f32 %v3490_v50, %v1896_v9 }
 0x8c4   : > { %v1914_v12 = vmax.f32 %v1897_v10, 0.0 }
 0x8c6   : > { %v1922_v15 = vpack.c.bf16 %v1914_v12, %v1913_v11 }
 0x8c8   : > { %2036 = vmatmul.bf16.gmra.mxu3 %v1922_v15 }
 0x8db   : > { %v2002_v51 = vpop.f32.mrf.mxu3 }
 0x8dc   : > { %v2003_v53 = vadd.f32 %v3491_v52, %v2002_v51 }
 0x8de   : > { %v2042_v20 = vmax.f32 %v2003_v53, 0.0  ;;  %v3347_v53 = vld [vmem:[#allocation8 + $0x130] sm:$0xff] }
 0x8e3   : > { %v2004_v54 = vpop.f32.mrf.mxu3 }
 0x8e4   : > { %v2005_v55 = vadd.f32 %v3491_v52, %v2004_v54  ;;  %v3346_v54 = vld [vmem:[#allocation8 + $0x128] sm:$0xff] }
 0x8e6   : > { %v2043_v56 = vmax.f32 %v2005_v55, 0.0  ;;  %v3345_v55 = vld [vmem:[#allocation8 + $0x120] sm:$0xff] }
 0x8e8   : > { %v2058_v63 = vpack.c.bf16 %v2043_v56, %v2042_v20  ;;  %v3344_v20 = vld [vmem:[#allocation8 + $0x118] sm:$0xff] }
 0x8eb   : > { %v2007_v59 = vpop.f32.mrf.mxu3 }
 0x8ec   : > { %v2008_v43 = vadd.f32 %v3491_v52, %v2007_v59 }
 0x8ee   : > { %v2044_v50 = vmax.f32 %v2008_v43, 0.0 }
 0x8f3   : > { %v2009_v58 = vpop.f32.mrf.mxu3 }
 0x8f4   : > { %v2010_v23 = vadd.f32 %v3491_v52, %v2009_v58 }
 0x8f6   : > { %v2045_v60 = vmax.f32 %v2010_v23, 0.0 }
 0x8f8   : > { %v2059_v61 = vpack.c.bf16 %v2045_v60, %v2044_v50 }
 0x8fb   : > { %v2012_v4 = vpop.f32.mrf.mxu3 }
 0x8fc   : > { %v2013_v5 = vadd.f32 %v3491_v52, %v2012_v4 }
 0x8fe   : > { %v2046_v57 = vmax.f32 %v2013_v5, 0.0 }
 0x903   : > { %v2014_v6 = vpop.f32.mrf.mxu3 }
 0x904   : > { %v2015_v13 = vadd.f32 %v3491_v52, %v2014_v6  ;;  %v3356_v6 = vld [vmem:[#allocation11 + $0x138] sm:$0xff] }
 0x905   : > { %2336 = vmatpush.bf16.msrb.mxu2 %v3356_v6 }
 0x906   : > { %v2047_v14 = vmax.f32 %v2015_v13, 0.0 }
 0x908   : > { %v2060_v16 = vpack.c.bf16 %v2047_v14, %v2046_v57  ;;  %v3355_v14 = vld [vmem:[#allocation11 + $0x130] sm:$0xff] }
 0x909   : > { %2337 = vmatpush.bf16.msrb.mxu2 %v3355_v14 }
 0x90b   : > { %v2017_v18 = vpop.f32.mrf.mxu3 }
 0x90c   : > { %v2018_v22 = vadd.f32 %v3491_v52, %v2017_v18 }
 0x90e   : > { %v2048_v26 = vmax.f32 %v2018_v22, 0.0  ;;  %v3353_v22 = vld [vmem:[#allocation11 + $0x120] sm:$0xff] }
 0x913   : > { %v2019_v24 = vpop.f32.mrf.mxu3 }
 0x914   : > { %v2020_v25 = vadd.f32 %v3491_v52, %v2019_v24  ;;  %v3352_v24 = vld [vmem:[#allocation11 + $0x118] sm:$0xff] }
 0x916   : > { %v2049_v27 = vmax.f32 %v2020_v25, 0.0 }
 0x918   : > { %v2061_v28 = vpack.c.bf16 %v2049_v27, %v2048_v26  ;;  %v3351_v27 = vld [vmem:[#allocation11 + $0x110] sm:$0xff] }
 0x91b   : > { %v2022_v19 = vpop.f32.mrf.mxu3 }
 0x91c   : > { %v2023_v9 = vadd.f32 %v3491_v52, %v2022_v19 }
 0x91e   : > { %v2050_v15 = vmax.f32 %v2023_v9, 0.0 }
 0x923   : > { %v2024_v29 = vpop.f32.mrf.mxu3 }
 0x924   : > { %v2025_v47 = vadd.f32 %v3491_v52, %v2024_v29  ;;  %v3349_v29 = vld [vmem:[#allocation11 + $0x100] sm:$0xff] }
 0x926   : > { %v2051_v11 = vmax.f32 %v2025_v47, 0.0 }
 0x928   : > { %v2062_v51 = vpack.c.bf16 %v2051_v11, %v2050_v15 }
 0x92b   : > { %v2027_v30 = vpop.f32.mrf.mxu3 }
 0x92c   : > { %v2028_v44 = vadd.f32 %v3491_v52, %v2027_v30 }
 0x92e   : > { %v2052_v10 = vmax.f32 %v2028_v44, 0.0 }
 0x933   : > { %v2029_v31 = vpop.f32.mrf.mxu3 }
 0x934   : > { %v2030_v42 = vadd.f32 %v3491_v52, %v2029_v31 }
 0x936   : > { %v2053_v48 = vmax.f32 %v2030_v42, 0.0 }
 0x938   : > { %v2063_v12 = vpack.c.bf16 %v2053_v48, %v2052_v10 }
 0x93b   : > { %v2032_v32 = vpop.f32.mrf.mxu3 }
 0x93c   : > { %v2033_v39 = vadd.f32 %v3491_v52, %v2032_v32 }
 0x93e   : > { %v2054_v46 = vmax.f32 %v2033_v39, 0.0 }
 0x943   : > { %v2034_v33 = vpop.f32.mrf.mxu3 }
 0x944   : > { %v2035_v37 = vadd.f32 %v3491_v52, %v2034_v33  ;;  %v3492_v33 = vld [vmem:[#allocation10 + $0x4] ss:$0 sm:$0xff] }
 0x946   : > { %v2055_v49 = vmax.f32 %v2035_v37, 0.0 }
 0x948   : > { %v2064_v8 = vpack.c.bf16 %v2055_v49, %v2054_v46 }
 0x94b   : > { %v2037_v34 = vpop.f32.mrf.mxu3 }
 0x94c   : > { %v2038_v35 = vadd.f32 %v3491_v52, %v2037_v34 }
 0x94e   : > { %v2056_v40 = vmax.f32 %v2038_v35, 0.0 }
 0x953   : > { %v2039_v36 = vpop.f32.mrf.mxu3 }
 0x954   : > { %v2040_v38 = vadd.f32 %v3491_v52, %v2039_v36  ;;  %v3348_v52 = vld [vmem:[#allocation8 + $0x138] sm:$0xff] }
 0x955   : > { %2193 = vmatpush.bf16.msrb.mxu1 %v3348_v52 }
 0x956   : > { %v2057_v41 = vmax.f32 %v2040_v38, 0.0 }
 0x958   : > { %v2065_v45 = vpack.c.bf16 %v2057_v41, %v2056_v40 }
 0x959   : > { %2194 = vmatpush.bf16.msrb.mxu1 %v3347_v53 }
 0x95a   : > { %2066 = vmatpush.bf16.msrb.mxu0 %v2065_v45 }
 0x95d   : > { %2195 = vmatpush.bf16.msrb.mxu1 %v3346_v54 }
 0x95e   : > { %2067 = vmatpush.bf16.msrb.mxu0 %v2064_v8 }
 0x961   : > { %2196 = vmatpush.bf16.msrb.mxu1 %v3345_v55 }
 0x962   : > { %2068 = vmatpush.bf16.msrb.mxu0 %v2063_v12 }
 0x965   : > { %2197 = vmatpush.bf16.msrb.mxu1 %v3344_v20 }
 0x966   : > { %2069 = vmatpush.bf16.msrb.mxu0 %v2062_v51 }
 0x96a   : > { %2070 = vmatpush.bf16.msrb.mxu0 %v2061_v28  ;;  %v3350_v28 = vld [vmem:[#allocation11 + $0x108] sm:$0xff] }
 0x96e   : > { %2071 = vmatpush.bf16.msrb.mxu0 %v2060_v16  ;;  %v3354_v16 = vld [vmem:[#allocation11 + $0x128] sm:$0xff] }
 0x96f   : > { %2338 = vmatpush.bf16.msrb.mxu2 %v3354_v16 }
 0x972   : > { %2072 = vmatpush.bf16.msrb.mxu0 %v2059_v61 }
 0x973   : > { %2339 = vmatpush.bf16.msrb.mxu2 %v3353_v22 }
 0x976   : > { %2073 = vmatpush.bf16.msrb.mxu0 %v2058_v63 }
 0x977   : > { %2340 = vmatpush.bf16.msrb.mxu2 %v3352_v24 }
 0x979   : > { %2074 = vmatmul.bf16.vlgmr.msrb.gmra.mxu0 %v4176_v62  ;;  %v3343_v62 = vld [vmem:[#allocation8 + $0x110] sm:$0xff] }
 0x97a   : > { %2198 = vmatpush.bf16.msrb.mxu1 %v3343_v62 }
 0x97b   : > { %2341 = vmatpush.bf16.msrb.mxu2 %v3351_v27  ;;  %v3493_v27 = vld [vmem:[%s4268_s6 + $0x4] ss:$0 sm:$0xff] }
 0x97f   : > { %2342 = vmatpush.bf16.msrb.mxu2 %v3350_v28 }
 0x983   : > { %2343 = vmatpush.bf16.msrb.mxu2 %v3349_v29 }
 0x989   : > { %2079 = vmatmul.bf16.gmra.mxu0 %v4180_v0  ;;  %v3342_v0 = vld [vmem:[#allocation8 + $0x108] sm:$0xff] }
 0x98a   : > { %2199 = vmatpush.bf16.msrb.mxu1 %v3342_v0 }
 0x999   : > { %2084 = vmatmul.bf16.gmra.mxu0 %v4184_v1  ;;  %v3341_v1 = vld [vmem:[#allocation8 + $0x100] sm:$0xff] }
 0x99a   : > { %2200 = vmatpush.bf16.msrb.mxu1 %v3341_v1 }
 0x9a9   : > { %2089 = vmatmul.bf16.gmra.mxu0 %v4188_v2 }
 0x9b9   : > { %2094 = vmatmul.bf16.gmra.mxu0 %v4192_v3 }
 0x9c9   : > { %2099 = vmatmul.bf16.gmra.mxu0 %v4196_v7 }
 0x9d9   : > { %2104 = vmatmul.bf16.gmra.mxu0 %v4200_v17 }
 0x9e9   : > { %2109 = vmatmul.bf16.gmra.mxu0 %v4204_v21 }
 0x9f6   : > { %v2075_v2 = vpop.f32.mrf.mxu0 }
 0x9fe   : > { %v2077_v3 = vpop.f32.mrf.mxu0 }
 0x9ff   : > { %v2115_v56 = vpack.c.bf16 %v2077_v3, %v2075_v2 }
 0xa01   : > { %2201 = vmatmul.bf16.vlgmr.msrb.gmra.mxu1 %v2115_v56 }
 0xa06   : > { %v2080_v7 = vpop.f32.mrf.mxu0 }
 0xa0e   : > { %v2082_v63 = vpop.f32.mrf.mxu0 }
 0xa0f   : > { %v2116_v59 = vpack.c.bf16 %v2082_v63, %v2080_v7 }
 0xa11   : > { %2206 = vmatmul.bf16.gmra.mxu1 %v2116_v59 }
 0xa16   : > { %v2085_v43 = vpop.f32.mrf.mxu0 }
 0xa1e   : > { %v2087_v58 = vpop.f32.mrf.mxu0 }
 0xa1f   : > { %v2117_v23 = vpack.c.bf16 %v2087_v58, %v2085_v43 }
 0xa21   : > { %2211 = vmatmul.bf16.gmra.mxu1 %v2117_v23 }
 0xa26   : > { %v2090_v50 = vpop.f32.mrf.mxu0 }
 0xa2e   : > { %v2092_v60 = vpop.f32.mrf.mxu0 }
 0xa2f   : > { %v2118_v17 = vpack.c.bf16 %v2092_v60, %v2090_v50 }
 0xa31   : > { %2216 = vmatmul.bf16.gmra.mxu1 %v2118_v17 }
 0xa36   : > { %v2095_v61 = vpop.f32.mrf.mxu0 }
 0xa3e   : > { %v2097_v4 = vpop.f32.mrf.mxu0 }
 0xa3f   : > { %v2119_v5 = vpack.c.bf16 %v2097_v4, %v2095_v61 }
 0xa41   : > { %2221 = vmatmul.bf16.gmra.mxu1 %v2119_v5 }
 0xa46   : > { %v2100_v21 = vpop.f32.mrf.mxu0 }
 0xa4e   : > { %v2102_v13 = vpop.f32.mrf.mxu0 }
 0xa4f   : > { %v2120_v57 = vpack.c.bf16 %v2102_v13, %v2100_v21 }
 0xa51   : > { %2226 = vmatmul.bf16.gmra.mxu1 %v2120_v57 }
 0xa56   : > { %v2105_v18 = vpop.f32.mrf.mxu0 }
 0xa5e   : > { %v2107_v25 = vpop.f32.mrf.mxu0 }
 0xa5f   : > { %v2121_v26 = vpack.c.bf16 %v2107_v25, %v2105_v18 }
 0xa61   : > { %2231 = vmatmul.bf16.gmra.mxu1 %v2121_v26 }
 0xa66   : > { %v2110_v19 = vpop.f32.mrf.mxu0 }
 0xa6e   : > { %v2112_v30 = vpop.f32.mrf.mxu0 }
 0xa6f   : > { %v2122_v31 = vpack.c.bf16 %v2112_v30, %v2110_v19 }
 0xa71   : > { %2236 = vmatmul.bf16.gmra.mxu1 %v2122_v31 }
 0xa7e   : > { %v2202_v32 = vpop.f32.mrf.mxu1 }
 0xa7f   : > { %v2203_v34 = vadd.f32 %v3492_v33, %v2202_v32 }
 0xa81   : > { %v2242_v37 = vmax.f32 %v2203_v34, 0.0 }
 0xa86   : > { %v2204_v35 = vpop.f32.mrf.mxu1 }
 0xa87   : > { %v2205_v36 = vadd.f32 %v3492_v33, %v2204_v35 }
 0xa89   : > { %v2243_v38 = vmax.f32 %v2205_v36, 0.0 }
 0xa8b   : > { %v2258_v39 = vpack.c.bf16 %v2243_v38, %v2242_v37 }
 0xa8d   : > { %2344 = vmatmul.bf16.vlgmr.msrb.gmra.mxu2 %v2258_v39 }
 0xa8e   : > { %v2207_v40 = vpop.f32.mrf.mxu1 }
 0xa8f   : > { %v2208_v41 = vadd.f32 %v3492_v33, %v2207_v40 }
 0xa91   : > { %v2244_v45 = vmax.f32 %v2208_v41, 0.0 }
 0xa96   : > { %v2209_v42 = vpop.f32.mrf.mxu1 }
 0xa97   : > { %v2210_v49 = vadd.f32 %v3492_v33, %v2209_v42 }
 0xa99   : > { %v2245_v44 = vmax.f32 %v2210_v49, 0.0 }
 0xa9b   : > { %v2259_v46 = vpack.c.bf16 %v2245_v44, %v2244_v45 }
 0xa9d   : > { %2349 = vmatmul.bf16.gmra.mxu2 %v2259_v46 }
 0xa9e   : > { %v2212_v47 = vpop.f32.mrf.mxu1 }
 0xa9f   : > { %v2213_v48 = vadd.f32 %v3492_v33, %v2212_v47 }
 0xaa1   : > { %v2246_v10 = vmax.f32 %v2213_v48, 0.0 }
 0xaa6   : > { %v2214_v8 = vpop.f32.mrf.mxu1 }
 0xaa7   : > { %v2215_v9 = vadd.f32 %v3492_v33, %v2214_v8 }
 0xaa9   : > { %v2247_v11 = vmax.f32 %v2215_v9, 0.0 }
 0xaab   : > { %v2260_v12 = vpack.c.bf16 %v2247_v11, %v2246_v10 }
 0xaad   : > { %2354 = vmatmul.bf16.gmra.mxu2 %v2260_v12 }
 0xaae   : > { %v2217_v15 = vpop.f32.mrf.mxu1 }
 0xaaf   : > { %v2218_v51 = vadd.f32 %v3492_v33, %v2217_v15 }
 0xab1   : > { %v2248_v54 = vmax.f32 %v2218_v51, 0.0 }
 0xab6   : > { %v2219_v52 = vpop.f32.mrf.mxu1 }
 0xab7   : > { %v2220_v53 = vadd.f32 %v3492_v33, %v2219_v52 }
 0xab9   : > { %v2249_v55 = vmax.f32 %v2220_v53, 0.0 }
 0xabb   : > { %v2261_v20 = vpack.c.bf16 %v2249_v55, %v2248_v54 }
 0xabd   : > { %2359 = vmatmul.bf16.gmra.mxu2 %v2261_v20 }
 0xabe   : > { %v2222_v62 = vpop.f32.mrf.mxu1 }
 0xabf   : > { %v2223_v0 = vadd.f32 %v3492_v33, %v2222_v62 }
 0xac1   : > { %v2250_v3 = vmax.f32 %v2223_v0, 0.0 }
 0xac6   : > { %v2224_v1 = vpop.f32.mrf.mxu1 }
 0xac7   : > { %v2225_v2 = vadd.f32 %v3492_v33, %v2224_v1 }
 0xac9   : > { %v2251_v56 = vmax.f32 %v2225_v2, 0.0 }
 0xacb   : > { %v2262_v7 = vpack.c.bf16 %v2251_v56, %v2250_v3 }
 0xacd   : > { %2364 = vmatmul.bf16.gmra.mxu2 %v2262_v7 }
 0xace   : > { %v2227_v63 = vpop.f32.mrf.mxu1 }
 0xacf   : > { %v2228_v59 = vadd.f32 %v3492_v33, %v2227_v63 }
 0xad1   : > { %v2252_v23 = vmax.f32 %v2228_v59, 0.0 }
 0xad6   : > { %v2229_v43 = vpop.f32.mrf.mxu1 }
 0xad7   : > { %v2230_v58 = vadd.f32 %v3492_v33, %v2229_v43 }
 0xad9   : > { %v2253_v50 = vmax.f32 %v2230_v58, 0.0 }
 0xadb   : > { %v2263_v60 = vpack.c.bf16 %v2253_v50, %v2252_v23 }
 0xadd   : > { %2369 = vmatmul.bf16.gmra.mxu2 %v2263_v60 }
 0xade   : > { %v2232_v17 = vpop.f32.mrf.mxu1 }
 0xadf   : > { %v2233_v61 = vadd.f32 %v3492_v33, %v2232_v17 }
 0xae1   : > { %v2254_v21 = vmax.f32 %v2233_v61, 0.0 }
 0xae6   : > { %v2234_v4 = vpop.f32.mrf.mxu1 }
 0xae7   : > { %v2235_v5 = vadd.f32 %v3492_v33, %v2234_v4 }
 0xae9   : > { %v2255_v6 = vmax.f32 %v2235_v5, 0.0 }
 0xaeb   : > { %v2264_v13 = vpack.c.bf16 %v2255_v6, %v2254_v21 }
 0xaed   : > { %2374 = vmatmul.bf16.gmra.mxu2 %v2264_v13 }
 0xaee   : > { %v2237_v57 = vpop.f32.mrf.mxu1 }
 0xaef   : > { %v2238_v14 = vadd.f32 %v3492_v33, %v2237_v57  ;;  %v3364_v57 = vld [vmem:[#allocation13 + $0x38] sm:$0xff] }
 0xaf1   : > { %v2256_v22 = vmax.f32 %v2238_v14, 0.0  ;;  %v2409_v14 = vld [vmem:[%s4104_s23] sm:$0xf]  ;;  %s4321_s23 = smov %s4320_s19 }
 0xaf2   : > { %s3768_s13 = scalar_lea.hbm %s4321_s23, 16  ;;  %p3769_p7 = scmp.lt.s32.totalorder %s3763_s28, %s4321_s23 }
 0xaf3   : > { %p3770_p11 = scmp.lt.s32.totalorder %s3768_s13, %s3764_s4 }
 0xaf5   : > { %p3771_p13 = por %p3770_p11, %p3769_p7 }
 0xaf6   : > { %v2239_v16 = vpop.f32.mrf.mxu1 }
 0xaf7   : > { %v2240_v18 = vadd.f32 %v3492_v33, %v2239_v16  ;;  %v3363_v16 = vld [vmem:[#allocation13 + $0x30] sm:$0xff]  ;;  %p3772_p4 = pnand %p3771_p13, %p3767_p10 }
 0xaf9   : > { %v2257_v24 = vmax.f32 %v2240_v18, 0.0  ;;  %v3362_v18 = vld [vmem:[#allocation13 + $0x28] sm:$0xff] }
 0xafb   : > { %v2265_v25 = vpack.c.bf16 %v2257_v24, %v2256_v22  ;;  %v3361_v22 = vld [vmem:[#allocation13 + $0x20] sm:$0xff]  ;;  %v3360_v24 = vld [vmem:[#allocation13 + $0x18] sm:$0xff] }
 0xafd   : > { %2379 = vmatmul.bf16.gmra.mxu2 %v2265_v25  ;;  %v3359_v25 = vld [vmem:[#allocation13 + $0x10] sm:$0xff] }
 0xb10   : > { %v2345_v26 = vpop.f32.mrf.mxu2 }
 0xb11   : > { %v2346_v28 = vadd.f32 %v3493_v27, %v2345_v26  ;;  %v3358_v26 = vld [vmem:[#allocation13 + $0x8] sm:$0xff] }
 0xb13   : > { %v2385_v30 = vmax.f32 %v2346_v28, 0.0  ;;  %v3372_v28 = vld [vmem:[#allocation14 + $0x38] sm:$0xff] }
 0xb18   : > { %v2347_v19 = vpop.f32.mrf.mxu2 }
 0xb19   : > { %v2348_v29 = vadd.f32 %v3493_v27, %v2347_v19  ;;  %v3371_v19 = vld [vmem:[#allocation14 + $0x30] sm:$0xff] }
 0xb1b   : > { %v2386_v31 = vmax.f32 %v2348_v29, 0.0  ;;  %v3370_v29 = vld [vmem:[#allocation14 + $0x28] sm:$0xff] }
 0xb1d   : > { %v2401_v32 = vpack.c.bf16 %v2386_v31, %v2385_v30  ;;  %v3369_v30 = vld [vmem:[#allocation14 + $0x20] sm:$0xff]  ;;  %v3368_v31 = vld [vmem:[#allocation14 + $0x18] sm:$0xff] }
 0xb20   : > { %v2350_v34 = vpop.f32.mrf.mxu2 }
 0xb21   : > { %v2351_v35 = vadd.f32 %v3493_v27, %v2350_v34 }
 0xb23   : > { %v2387_v33 = vmax.f32 %v2351_v35, 0.0 }
 0xb28   : > { %v2352_v36 = vpop.f32.mrf.mxu2 }
 0xb29   : > { %v2353_v37 = vadd.f32 %v3493_v27, %v2352_v36 }
 0xb2b   : > { %v2388_v38 = vmax.f32 %v2353_v37, 0.0  ;;  %v3366_v37 = vld [vmem:[#allocation14 + $0x8] sm:$0xff] }
 0xb2d   : > { %v2402_v39 = vpack.c.bf16 %v2388_v38, %v2387_v33  ;;  %v3365_v33 = vld [vmem:[#allocation14] sm:$0xff]  ;;  %v3494_v38 = vld [vmem:[%s4270_s8] ss:$0 sm:$0xff] }
 0xb30   : > { %v2355_v40 = vpop.f32.mrf.mxu2 }
 0xb31   : > { %v2356_v41 = vadd.f32 %v3493_v27, %v2355_v40 }
 0xb33   : > { %v2389_v45 = vmax.f32 %v2356_v41, 0.0 }
 0xb38   : > { %v2357_v42 = vpop.f32.mrf.mxu2 }
 0xb39   : > { %v2358_v49 = vadd.f32 %v3493_v27, %v2357_v42 }
 0xb3b   : > { %v2390_v44 = vmax.f32 %v2358_v49, 0.0 }
 0xb3d   : > { %v2403_v46 = vpack.c.bf16 %v2390_v44, %v2389_v45  ;;  %v3495_v45 = vld [vmem:[%s4272_s10] ss:$0 sm:$0xff] }
 0xb40   : > { %v2360_v47 = vpop.f32.mrf.mxu2 }
 0xb41   : > { %v2361_v48 = vadd.f32 %v3493_v27, %v2360_v47 }
 0xb43   : > { %v2391_v10 = vmax.f32 %v2361_v48, 0.0 }
 0xb48   : > { %v2362_v8 = vpop.f32.mrf.mxu2 }
 0xb49   : > { %v2363_v9 = vadd.f32 %v3493_v27, %v2362_v8 }
 0xb4b   : > { %v2392_v11 = vmax.f32 %v2363_v9, 0.0 }
 0xb4d   : > { %v2404_v12 = vpack.c.bf16 %v2392_v11, %v2391_v10 }
 0xb50   : > { %v2365_v15 = vpop.f32.mrf.mxu2 }
 0xb51   : > { %v2366_v61 = vadd.f32 %v3493_v27, %v2365_v15 }
 0xb53   : > { %v2393_v6 = vmax.f32 %v2366_v61, 0.0 }
 0xb58   : > { %v2367_v51 = vpop.f32.mrf.mxu2 }
 0xb59   : > { %v2368_v50 = vadd.f32 %v3493_v27, %v2367_v51 }
 0xb5b   : > { %v2394_v5 = vmax.f32 %v2368_v50, 0.0 }
 0xb5d   : > { %v2405_v13 = vpack.c.bf16 %v2394_v5, %v2393_v6 }
 0xb60   : > { %v2370_v52 = vpop.f32.mrf.mxu2 }
 0xb61   : > { %v2371_v58 = vadd.f32 %v3493_v27, %v2370_v52 }
 0xb63   : > { %v2395_v4 = vmax.f32 %v2371_v58, 0.0 }
 0xb68   : > { %v2372_v53 = vpop.f32.mrf.mxu2 }
 0xb69   : > { %v2373_v63 = vadd.f32 %v3493_v27, %v2372_v53 }
 0xb6b   : > { %v2396_v60 = vmax.f32 %v2373_v63, 0.0 }
 0xb6d   : > { %v2406_v21 = vpack.c.bf16 %v2396_v60, %v2395_v4 }
 0xb70   : > { %v2375_v54 = vpop.f32.mrf.mxu2 }
 0xb71   : > { %v2376_v3 = vadd.f32 %v3493_v27, %v2375_v54 }
 0xb73   : > { %v2397_v23 = vmax.f32 %v2376_v3, 0.0 }
 0xb78   : > { %v2377_v55 = vpop.f32.mrf.mxu2 }
 0xb79   : > { %v2378_v1 = vadd.f32 %v3493_v27, %v2377_v55 }
 0xb7b   : > { %v2398_v59 = vmax.f32 %v2378_v1, 0.0 }
 0xb7d   : > { %v2407_v17 = vpack.c.bf16 %v2398_v59, %v2397_v23 }
 0xb80   : > { %v2380_v20 = vpop.f32.mrf.mxu2 }
 0xb81   : > { %v2381_v62 = vadd.f32 %v3493_v27, %v2380_v20 }
 0xb83   : > { %v2399_v56 = vmax.f32 %v2381_v62, 0.0 }
 0xb88   : > { %v2382_v0 = vpop.f32.mrf.mxu2 }
 0xb89   : > { %v2383_v2 = vadd.f32 %v3493_v27, %v2382_v0  ;;  %v3357_v27 = vld [vmem:[#allocation13] sm:$0xff] }
 0xb8b   : > { %v2400_v7 = vmax.f32 %v2383_v2, 0.0 }
 0xb8d   : > { %v2408_v43 = vpack.c.bf16 %v2400_v7, %v2399_v56 }
 0xb8f   : > { %2410 = vmatpush.bf16.msrb.mxu3 %v2408_v43 }
 0xb93   : > { %2411 = vmatpush.bf16.msrb.mxu3 %v2407_v17 }
 0xb97   : > { %2412 = vmatpush.bf16.msrb.mxu3 %v2406_v21 }
 0xb9b   : > { %2413 = vmatpush.bf16.msrb.mxu3 %v2405_v13 }
 0xb9f   : > { %2414 = vmatpush.bf16.msrb.mxu3 %v2404_v12 }
 0xba3   : > { %2415 = vmatpush.bf16.msrb.mxu3 %v2403_v46 }
 0xba7   : > { %2416 = vmatpush.bf16.msrb.mxu3 %v2402_v39 }
 0xbab   : > { %2417 = vmatpush.bf16.msrb.mxu3 %v2401_v32  ;;  %v3367_v32 = vld [vmem:[#allocation14 + $0x10] sm:$0xff] }
 0xbae   : > { %2418 = vmatmul.bf16.vlgmr.msrb.gmra.mxu3 %v2409_v14 }
 0xbaf   : > { %2492 = vmatpush.bf16.msra.mxu3 %v3364_v57 }
 0xbb3   : > { %2493 = vmatpush.bf16.msra.mxu3 %v3363_v16 }
 0xbb7   : > { %2494 = vmatpush.bf16.msra.mxu3 %v3362_v18 }
 0xbbb   : > { %2495 = vmatpush.bf16.msra.mxu3 %v3361_v22 }
 0xbbf   : > { %2496 = vmatpush.bf16.msra.mxu3 %v3360_v24 }
 0xbc3   : > { %2497 = vmatpush.bf16.msra.mxu3 %v3359_v25 }
 0xbc7   : > { %2498 = vmatpush.bf16.msra.mxu3 %v3358_v26 }
 0xbcb   : > { %2499 = vmatpush.bf16.msra.mxu3 %v3357_v27 }
 0xbcf   : > { %2575 = vmatpush.bf16.msrb.mxu3 %v3372_v28 }
 0xbd3   : > { %2576 = vmatpush.bf16.msrb.mxu3 %v3371_v19 }
 0xbd7   : > { %2577 = vmatpush.bf16.msrb.mxu3 %v3370_v29 }
 0xbdb   : > { %2578 = vmatpush.bf16.msrb.mxu3 %v3369_v30 }
 0xbdf   : > { %2579 = vmatpush.bf16.msrb.mxu3 %v3368_v31 }
 0xbe3   : > { %2580 = vmatpush.bf16.msrb.mxu3 %v3367_v32 }
 0xbe7   : > { %2581 = vmatpush.bf16.msrb.mxu3 %v3366_v37 }
 0xbeb   : > { %2582 = vmatpush.bf16.msrb.mxu3 %v3365_v33 }
 0xc31   : > { %v2419_v34 = vpop.f32.mrf.mxu3 }
 0xc32   : > { %v2423_v35 = vpack.c.bf16 %v2419_v34, %v2419_v34 }
 0xc34   : > { %2500 = vmatmul.bf16.vlgmr.msra.gmra.mxu3 %v2423_v35 }
 0xc39   : > { %v2421_v36 = vpop.f32.mrf.mxu3 }
 0xcb7   : > { %v2501_v39 = vpop.f32.mrf.mxu3 }
 0xcb8   : > { %v2502_v40 = vadd.f32 %v3494_v38, %v2501_v39 }
 0xcba   : > { %v2505_v41 = vmax.f32 %v2502_v40, 0.0 }
 0xcbc   : > { %v2506_v42 = vpack.c.bf16 %v2505_v41, %v2505_v41 }
 0xcbe   : > { %2583 = vmatmul.bf16.vlgmr.msrb.gmra.mxu3 %v2506_v42 }
 0xcbf   : > { %v2503_v49 = vpop.f32.mrf.mxu3 }
 0xd41   : > { %v2584_v44 = vpop.f32.mrf.mxu3 }
 0xd42   : > { %v2585_v46 = vadd.f32 %v3495_v45, %v2584_v44 }
 0xd44   : > { %2588 = vmax.xlane.f32.xlu0 %v2585_v46 }
 0xd49   : > { %v2586_v47 = vpop.f32.mrf.mxu3 }
 0xdb7   : > { %v2589_v48 = vpop.xlane.xlu0 %2588 }
 0xdb8   : > { %v2590_v8 = vsub.f32 %v2585_v46, %v2589_v48 }
 0xdba   : > { %v2591_v9 = vmul.f32 1.442695, %v2590_v8 }
 0xdbc   : > { %3496 = vpow2.f32 %v2591_v9 }
 0xdc2   : > { %v3497_v10 = vpop.eup %3496 }
 0xdc3   : > { %2593 = vadd.xlane.f32.xlu0 %v3497_v10 }
 0xe36   : > { %v2594_v11 = vpop.xlane.xlu0 %2593 }
 0xe37   : > { %3498 = vlog2.f32 %v2594_v11 }
 0xe3d   : > { %v3499_v12 = vpop.eup %3498 }
 0xe3e   : > { %v2596_v15 = vmul.f32 0.6931472, %v3499_v12 }
 0xe40   : > { %v2597_v51 = vadd.f32 %v2596_v15, %v2589_v48 }
 0xe42   : > { %v2598_v52 = vsub.f32 %v2585_v46, %v2597_v51 }
 0xe44   : > { %2599 = vst [vmem:[%s567_s11] sm:$0xff] %v2598_v52 }
 0xe45   : > { %3775 = shalt.err (!%p3772_p4)
}
 0xe46   : > { %3399 = dma.vmem_to_hbm [thread:$0]  (%p3971_p12), %s2614_s17, 128, %s2616_s1, %s2601_s16  }
 0xe47 PF: > { %s4323_s3 = sld [smem:[#allocation23_spill]]  ;;  %p4325_p2 = scmp.ge.s32.totalorder %s3830_s20, 2 }
 0xe49   : > { %p3428_p9 = pnand %p4325_p2, %p3989_p6 }
 0xe4b   : > { %p3429_p3 = pneg %p3428_p9 }
 0xe4d   : > { %s2627_s14 = sand.u32 1, %s4323_s3  }
 0xe4e   : > { %s2628_s27 = scalar_lea.sflag [#allocation4], %s2627_s14 }
 0xe4f   : > { %3813 = dma.done.wait (%p3429_p3), %s2628_s27, 128  }
 0xe50   : > { %3815 = vsyncadd (%p3429_p3), %s2628_s27, 4294967168  ;;  %s4326_s20 = sld [smem:[#allocation25_spill]]  ;;  %s4329_s17 = smov %s3822_s18 }
 0xe51   : > { %s4327_s22 = sld [smem:[#allocation24_spill]] }
 0xe52   : > { %s4328_s19 = sld [smem:[#allocation27_spill]] }
 0xe56   : > { %p30_p5 = scmp.ge.s32.totalorder %s4326_s20, 4  }
 0xe57   : > { %s4330_s18 = smov %s4327_s22 }
 0xe58   :  { %32 = sbr.rel (!%p30_p5) target bundleno = 16 (0x10), region = 169 }
 0xe5d   :  { %2634 = vsyncpa [#allocation3], 1 }
 0xe5e   :  { %2636 = vsyncpa [#allocation3 + $0x1], 1 }
 0xe5f   :  { %2637 = vsyncpa [#allocation6], 1 }
 0xe60   :  { %2639 = vsyncpa [#allocation6 + $0x1], 1 }
 0xe61   :  { %2640 = vsyncpa [#allocation9], 1 }
 0xe62   :  { %2641 = vsyncpa [#allocation12], 1 }
 0xe63   :  { %2642 = vsyncpa [#allocation15], 1 }
 0xe64   :  { %2643 = vsyncpa [#allocation4], 1 }
 0xe65   :  { %2645 = vsyncpa [#allocation4 + $0x1], 1 }

</bundles_post_ra>
